<compile_context>
chip_gen: v5e
topology: v5e:2x2
jax: 0.10.0
libtpu: 0.0.40
codegen_flags: <defaults>
</compile_context>

<pallas_src>
import jax
import jax.numpy as jnp
from jax import lax
from jax.experimental import pallas as pl
from jax.experimental.pallas import tpu as pltpu


# ---------------------------------------------------------------------------
# Kernel: one batch element per grid step.
# ---------------------------------------------------------------------------
def _attention_kernel(q_ref, acat_ref, pmem_ref, mem_ref, bias_ref,
                      wq_ref, wfused_ref, v_ref,
                      ctx_ref, attw_ref):
    T = pmem_ref.shape[0]          # max_time
    K = wfused_ref.shape[0]        # conv kernel size (static)

    # 1) Query projection (bias=False): (1, Drnn) @ (Drnn, A) -> (1, A)  [MXU]
    pq = jnp.dot(q_ref[...], wq_ref[...], preferred_element_type=jnp.float32)

    # 2) s = pq + processed_memory + location_term.  The conv (2->F, 'same')
    #    and its dense projection (F->A) are pre-folded into wfused (K,2,A),
    #    so this is K static shifted MAC steps on lane-dense (T, A) slabs.
    s = pq + pmem_ref[...]                           # (1,A) broadcasts over T
    for k in range(K):                               # K is small & static
        xk = acat_ref[pl.ds(k, T), :]                # (T, 2) shifted window
        wk = wfused_ref[k]                           # (2, A)
        s = s + xk[:, 0:1] * wk[0:1, :] + xk[:, 1:2] * wk[1:2, :]

    # 3) energies = tanh(s) @ v_col  -> (T, 1)   [EUP tanh + MXU matvec]
    e = jnp.dot(jnp.tanh(s), v_ref[...], preferred_element_type=jnp.float32)
    e = e + bias_ref[...]                            # additive mask: 0 / -inf

    # 4) softmax over T (sublane axis)
    m = jnp.max(e, axis=0, keepdims=True)
    p = jnp.exp(e - m)
    w = p / jnp.sum(p, axis=0, keepdims=True)        # (T, 1)
    attw_ref[...] = w.astype(attw_ref.dtype)

    # 5) context = w^T @ memory as broadcast-multiply + sublane reduce -> (1, E)
    ctx_ref[...] = jnp.sum(w * mem_ref[...], axis=0, keepdims=True).astype(ctx_ref.dtype)


# ---------------------------------------------------------------------------
# Wrapper
# ---------------------------------------------------------------------------
@jax.jit
def attention_forward(params, attention_hidden_state, memory, processed_memory,
                      attention_weights_cat, mask=None):
    """Returns (attention_context (B,E), attention_weights (B,T))."""
    B, T, E = memory.shape
    Drnn, A = params["wq_t"].shape
    K = params["w_fused"].shape[0]
    P = (K - 1) // 2

    q3 = attention_hidden_state.reshape(B, 1, Drnn)
    # layout plumbing for the conv: (B,2,T) -> (B, T+2P, 2), zero 'same' padding
    acat = jnp.swapaxes(attention_weights_cat, 1, 2)
    acat = jnp.pad(acat, ((0, 0), (P, P), (0, 0)))
    if mask is None:
        bias3 = jnp.zeros((B, T, 1), jnp.float32)
    else:
        bias3 = jnp.where(mask, -jnp.inf, 0.0).astype(jnp.float32).reshape(B, T, 1)

    ctx3, attw3 = pl.pallas_call(
        _attention_kernel,
        out_shape=(jax.ShapeDtypeStruct((B, 1, E), jnp.float32),
                   jax.ShapeDtypeStruct((B, T, 1), jnp.float32)),
        grid=(B,),
        in_specs=[
            pl.BlockSpec((None, 1, Drnn),      lambda b: (b, 0, 0)),   # query
            pl.BlockSpec((None, T + 2 * P, 2), lambda b: (b, 0, 0)),   # att cat (padded, T-major)
            pl.BlockSpec((None, T, A),         lambda b: (b, 0, 0)),   # processed_memory
            pl.BlockSpec((None, T, E),         lambda b: (b, 0, 0)),   # memory
            pl.BlockSpec((None, T, 1),         lambda b: (b, 0, 0)),   # mask bias (0/-inf)
            pl.BlockSpec((Drnn, A),            lambda b: (0, 0)),      # Wq^T
            pl.BlockSpec((K, 2, A),            lambda b: (0, 0, 0)),   # fused conv+loc W
            pl.BlockSpec((A, 1),               lambda b: (0, 0)),      # v (column)
        ],
        out_specs=(
            pl.BlockSpec((None, 1, E), lambda b: (b, 0, 0)),           # context (lane-dense)
            pl.BlockSpec((None, T, 1), lambda b: (b, 0, 0)),           # attention weights
        ),
        compiler_params=pltpu.CompilerParams(
            dimension_semantics=("parallel",)),
    )(q3, acat, processed_memory, memory, bias3,
      params["wq_t"], params["w_fused"], params["v_col"])

    return ctx3.reshape(B, E), attw3.reshape(B, T)


# ---------------------------------------------------------------------------
# Weight init (PyTorch layouts) + one-time kernel-layout preparation
# ---------------------------------------------------------------------------
def init_attention_weights(key, attention_rnn_dim, embedding_dim, attention_dim,
                           n_filters, kernel_size):
    ks = jax.random.split(key, 5)

    def uni(k, shape, fan_in):
        b = float(fan_in) ** -0.5
        return jax.random.uniform(k, shape, jnp.float32, -b, b)

    return {
        "w_query":  uni(ks[0], (attention_dim, attention_rnn_dim), attention_rnn_dim),
        "w_memory": uni(ks[1], (attention_dim, embedding_dim), embedding_dim),
        "w_v":      uni(ks[2], (1, attention_dim), attention_dim),
        "w_conv":   uni(ks[3], (n_filters, 2, kernel_size), 2 * kernel_size),
        "w_loc":    uni(ks[4], (attention_dim, n_filters), n_filters),
    }


def prepare_kernel_params(raw):
    """One-time re-layout / fusion of weights for the kernel.

    Wfused[k, c, a] = sum_f Wconv[f, c, k] * Wloc[a, f]
    so that  (conv then F->A dense)  ==  K shifted MACs with Wfused.
    """
    w_fused = jnp.einsum("fck,af->kca", raw["w_conv"], raw["w_loc"])
    return {
        "wq_t":    jnp.transpose(raw["w_query"]),   # (Drnn, A)
        "w_fused": w_fused,                         # (K, 2, A)
        "v_col":   jnp.transpose(raw["w_v"]),       # (A, 1)
    }


# ---------------------------------------------------------------------------
# Pure-JAX reference (independent path: lax conv + einsums, raw weights)
# ---------------------------------------------------------------------------
def attention_reference(raw, query, memory, processed_memory, att_cat, mask):
    P = (raw["w_conv"].shape[2] - 1) // 2
    hi = lax.Precision.HIGHEST
    pq = jnp.einsum("bd,ad->ba", query, raw["w_query"], precision=hi)[:, None, :]
    conv = lax.conv_general_dilated(att_cat, raw["w_conv"], window_strides=(1,),
                                    padding=[(P, P)],
                                    dimension_numbers=("NCH", "OIH", "NCH"),
                                    precision=hi)                       # (B, F, T)
    ploc = jnp.einsum("bft,af->bta", conv, raw["w_loc"], precision=hi)  # (B, T, A)
    e = jnp.einsum("bta,a->bt", jnp.tanh(pq + ploc + processed_memory),
                   raw["w_v"][0], precision=hi)
    e = jnp.where(mask, -jnp.inf, e)
    w = jax.nn.softmax(e, axis=1)
    ctx = jnp.einsum("bt,bte->be", w, memory, precision=hi)
    return ctx, w


if __name__ == "__main__":
    key = jax.random.PRNGKey(0)
    kw, kq, km, ka = jax.random.split(key, 4)

    # Small but lane-friendly shapes implied by the module.
    B, T = 2, 128
    ATTN_RNN_DIM, EMBED_DIM, ATTN_DIM = 128, 128, 128
    N_FILTERS, KERNEL_SIZE = 8, 5

    raw = init_attention_weights(kw, ATTN_RNN_DIM, EMBED_DIM, ATTN_DIM,
                                 N_FILTERS, KERNEL_SIZE)
    params = prepare_kernel_params(raw)

    query = jax.random.normal(kq, (B, ATTN_RNN_DIM), jnp.float32)
    memory = jax.random.normal(km, (B, T, EMBED_DIM), jnp.float32)
    # processed_memory = memory_layer(memory) is computed once outside forward,
    # exactly as the Tacotron decoder does.
    processed_memory = jnp.einsum("bte,ae->bta", memory, raw["w_memory"])
    prev = jax.nn.softmax(jax.random.normal(ka, (B, T), jnp.float32), axis=-1)
    att_cat = jnp.stack([prev, jnp.cumsum(prev, axis=-1)], axis=1)   # (B, 2, T)
    lengths = jnp.array([T, T - 40], jnp.int32)
    mask = jnp.arange(T)[None, :] >= lengths[:, None]                # True = padded

    ctx, attw = attention_forward(params, query, memory, processed_memory,
                                  att_cat, mask)
    ctx, attw = jax.block_until_ready((ctx, attw))

    assert ctx.shape == (B, EMBED_DIM) and attw.shape == (B, T)
    assert bool(jnp.all(jnp.isfinite(ctx))) and bool(jnp.all(jnp.isfinite(attw)))
    assert bool(jnp.all(jnp.abs(jnp.sum(attw, axis=1) - 1.0) < 1e-3))
    assert bool(jnp.all(jnp.where(mask, attw, 0.0) < 1e-6))   # padded -> ~0 weight

    ref_ctx, ref_w = attention_reference(raw, query, memory, processed_memory,
                                         att_cat, mask)
    assert bool(jnp.allclose(attw, ref_w, rtol=3e-2, atol=1e-4)), "weights mismatch"
    assert bool(jnp.allclose(ctx, ref_ctx, rtol=3e-2, atol=3e-3)), "context mismatch"

    print("KERNEL_OK")
</pallas_src>

<mosaic_0001>
module attributes {stable_mosaic.version = 11 : i64} {
  func.func @_attention_kernel(%arg0: i32, %arg1: memref<1x1x128xf32, #tpu.memory_space<vmem>>, %arg2: memref<1x132x2xf32, #tpu.memory_space<vmem>>, %arg3: memref<1x128x128xf32, #tpu.memory_space<vmem>>, %arg4: memref<1x128x128xf32, #tpu.memory_space<vmem>>, %arg5: memref<1x128x1xf32, #tpu.memory_space<vmem>>, %arg6: memref<128x128xf32, #tpu.memory_space<vmem>>, %arg7: memref<5x2x128xf32, #tpu.memory_space<vmem>>, %arg8: memref<128x1xf32, #tpu.memory_space<vmem>>, %arg9: memref<1x1x128xf32, #tpu.memory_space<vmem>>, %arg10: memref<1x128x1xf32, #tpu.memory_space<vmem>>) attributes {dimension_semantics = [#tpu.dimension_semantics<parallel>], iteration_bounds = array<i64: 2>, scalar_prefetch = 0 : i64, scratch_operands = 0 : i64, tpu.core_type = #tpu.core_type<tc>, window_params = [{transform_indices = @transform_0, window_bounds = array<i64: 1, 1, 128>}, {transform_indices = @transform_1, window_bounds = array<i64: 1, 132, 2>}, {transform_indices = @transform_2, window_bounds = array<i64: 1, 128, 128>}, {transform_indices = @transform_3, window_bounds = array<i64: 1, 128, 128>}, {transform_indices = @transform_4, window_bounds = array<i64: 1, 128, 1>}, {pipeline_mode = #tpu.pipeline_mode<synchronous>, transform_indices = @transform_5, window_bounds = array<i64: 128, 128>}, {pipeline_mode = #tpu.pipeline_mode<synchronous>, transform_indices = @transform_6, window_bounds = array<i64: 5, 2, 128>}, {pipeline_mode = #tpu.pipeline_mode<synchronous>, transform_indices = @transform_7, window_bounds = array<i64: 128, 1>}, {transform_indices = @transform_8, window_bounds = array<i64: 1, 1, 128>}, {transform_indices = @transform_9, window_bounds = array<i64: 1, 128, 1>}]} {
    %c0 = arith.constant 0 : index
    %c0_0 = arith.constant 0 : index
    %c0_1 = arith.constant 0 : index
    %0 = vector.load %arg1[%c0, %c0_0, %c0_1] : memref<1x1x128xf32, #tpu.memory_space<vmem>>, vector<1x1x128xf32>
    %1 = vector.shape_cast %0 : vector<1x1x128xf32> to vector<1x128xf32>
    %c0_2 = arith.constant 0 : index
    %c0_3 = arith.constant 0 : index
    %2 = vector.load %arg6[%c0_2, %c0_3] : memref<128x128xf32, #tpu.memory_space<vmem>>, vector<128x128xf32>
    %cst = arith.constant dense<0.000000e+00> : vector<1x128xf32>
    %3 = tpu.matmul %1, %2, %cst {dimension_numbers = #tpu.dot_dimension_numbers<[1], [0], [0], [1], [0, 0, 1, 1], [], []>} : vector<1x128xf32>, vector<128x128xf32>, vector<1x128xf32> -> vector<1x128xf32>
    %c0_4 = arith.constant 0 : index
    %c0_5 = arith.constant 0 : index
    %c0_6 = arith.constant 0 : index
    %4 = vector.load %arg3[%c0_4, %c0_5, %c0_6] : memref<1x128x128xf32, #tpu.memory_space<vmem>>, vector<1x128x128xf32>
    %5 = vector.shape_cast %4 : vector<1x128x128xf32> to vector<128x128xf32>
    %6 = vector.broadcast %3 : vector<1x128xf32> to vector<128x128xf32>
    %7 = arith.addf %6, %5 : vector<128x128xf32>
    %c0_7 = arith.constant 0 : index
    %c0_8 = arith.constant 0 : index
    %c0_9 = arith.constant 0 : index
    %8 = vector.load %arg2[%c0_7, %c0_8, %c0_9] : memref<1x132x2xf32, #tpu.memory_space<vmem>>, vector<1x128x2xf32>
    %9 = vector.shape_cast %8 : vector<1x128x2xf32> to vector<128x2xf32>
    %c0_10 = arith.constant 0 : index
    %c0_11 = arith.constant 0 : index
    %c0_12 = arith.constant 0 : index
    %10 = vector.load %arg7[%c0_10, %c0_11, %c0_12] : memref<5x2x128xf32, #tpu.memory_space<vmem>>, vector<1x2x128xf32>
    %11 = vector.shape_cast %10 : vector<1x2x128xf32> to vector<2x128xf32>
    %12 = vector.extract_strided_slice %9 {offsets = [0, 0], sizes = [128, 1], strides = [1, 1]} : vector<128x2xf32> to vector<128x1xf32>
    %13 = vector.extract_strided_slice %11 {offsets = [0, 0], sizes = [1, 128], strides = [1, 1]} : vector<2x128xf32> to vector<1x128xf32>
    %14 = vector.broadcast %12 : vector<128x1xf32> to vector<128x128xf32>
    %15 = vector.broadcast %13 : vector<1x128xf32> to vector<128x128xf32>
    %16 = arith.mulf %14, %15 : vector<128x128xf32>
    %17 = arith.addf %7, %16 : vector<128x128xf32>
    %18 = vector.extract_strided_slice %9 {offsets = [0, 1], sizes = [128, 1], strides = [1, 1]} : vector<128x2xf32> to vector<128x1xf32>
    %19 = vector.extract_strided_slice %11 {offsets = [1, 0], sizes = [1, 128], strides = [1, 1]} : vector<2x128xf32> to vector<1x128xf32>
    %20 = vector.broadcast %18 : vector<128x1xf32> to vector<128x128xf32>
    %21 = vector.broadcast %19 : vector<1x128xf32> to vector<128x128xf32>
    %22 = arith.mulf %20, %21 : vector<128x128xf32>
    %23 = arith.addf %17, %22 : vector<128x128xf32>
    %c0_13 = arith.constant 0 : index
    %c1 = arith.constant 1 : index
    %c0_14 = arith.constant 0 : index
    %24 = vector.load %arg2[%c0_13, %c1, %c0_14] : memref<1x132x2xf32, #tpu.memory_space<vmem>>, vector<1x128x2xf32>
    %25 = vector.shape_cast %24 : vector<1x128x2xf32> to vector<128x2xf32>
    %c1_15 = arith.constant 1 : index
    %c0_16 = arith.constant 0 : index
    %c0_17 = arith.constant 0 : index
    %26 = vector.load %arg7[%c1_15, %c0_16, %c0_17] : memref<5x2x128xf32, #tpu.memory_space<vmem>>, vector<1x2x128xf32>
    %27 = vector.shape_cast %26 : vector<1x2x128xf32> to vector<2x128xf32>
    %28 = vector.extract_strided_slice %25 {offsets = [0, 0], sizes = [128, 1], strides = [1, 1]} : vector<128x2xf32> to vector<128x1xf32>
    %29 = vector.extract_strided_slice %27 {offsets = [0, 0], sizes = [1, 128], strides = [1, 1]} : vector<2x128xf32> to vector<1x128xf32>
    %30 = vector.broadcast %28 : vector<128x1xf32> to vector<128x128xf32>
    %31 = vector.broadcast %29 : vector<1x128xf32> to vector<128x128xf32>
    %32 = arith.mulf %30, %31 : vector<128x128xf32>
    %33 = arith.addf %23, %32 : vector<128x128xf32>
    %34 = vector.extract_strided_slice %25 {offsets = [0, 1], sizes = [128, 1], strides = [1, 1]} : vector<128x2xf32> to vector<128x1xf32>
    %35 = vector.extract_strided_slice %27 {offsets = [1, 0], sizes = [1, 128], strides = [1, 1]} : vector<2x128xf32> to vector<1x128xf32>
    %36 = vector.broadcast %34 : vector<128x1xf32> to vector<128x128xf32>
    %37 = vector.broadcast %35 : vector<1x128xf32> to vector<128x128xf32>
    %38 = arith.mulf %36, %37 : vector<128x128xf32>
    %39 = arith.addf %33, %38 : vector<128x128xf32>
    %c0_18 = arith.constant 0 : index
    %c2 = arith.constant 2 : index
    %c0_19 = arith.constant 0 : index
    %40 = vector.load %arg2[%c0_18, %c2, %c0_19] : memref<1x132x2xf32, #tpu.memory_space<vmem>>, vector<1x128x2xf32>
    %41 = vector.shape_cast %40 : vector<1x128x2xf32> to vector<128x2xf32>
    %c2_20 = arith.constant 2 : index
    %c0_21 = arith.constant 0 : index
    %c0_22 = arith.constant 0 : index
    %42 = vector.load %arg7[%c2_20, %c0_21, %c0_22] : memref<5x2x128xf32, #tpu.memory_space<vmem>>, vector<1x2x128xf32>
    %43 = vector.shape_cast %42 : vector<1x2x128xf32> to vector<2x128xf32>
    %44 = vector.extract_strided_slice %41 {offsets = [0, 0], sizes = [128, 1], strides = [1, 1]} : vector<128x2xf32> to vector<128x1xf32>
    %45 = vector.extract_strided_slice %43 {offsets = [0, 0], sizes = [1, 128], strides = [1, 1]} : vector<2x128xf32> to vector<1x128xf32>
    %46 = vector.broadcast %44 : vector<128x1xf32> to vector<128x128xf32>
    %47 = vector.broadcast %45 : vector<1x128xf32> to vector<128x128xf32>
    %48 = arith.mulf %46, %47 : vector<128x128xf32>
    %49 = arith.addf %39, %48 : vector<128x128xf32>
    %50 = vector.extract_strided_slice %41 {offsets = [0, 1], sizes = [128, 1], strides = [1, 1]} : vector<128x2xf32> to vector<128x1xf32>
    %51 = vector.extract_strided_slice %43 {offsets = [1, 0], sizes = [1, 128], strides = [1, 1]} : vector<2x128xf32> to vector<1x128xf32>
    %52 = vector.broadcast %50 : vector<128x1xf32> to vector<128x128xf32>
    %53 = vector.broadcast %51 : vector<1x128xf32> to vector<128x128xf32>
    %54 = arith.mulf %52, %53 : vector<128x128xf32>
    %55 = arith.addf %49, %54 : vector<128x128xf32>
    %c0_23 = arith.constant 0 : index
    %c3 = arith.constant 3 : index
    %c0_24 = arith.constant 0 : index
    %56 = vector.load %arg2[%c0_23, %c3, %c0_24] : memref<1x132x2xf32, #tpu.memory_space<vmem>>, vector<1x128x2xf32>
    %57 = vector.shape_cast %56 : vector<1x128x2xf32> to vector<128x2xf32>
    %c3_25 = arith.constant 3 : index
    %c0_26 = arith.constant 0 : index
    %c0_27 = arith.constant 0 : index
    %58 = vector.load %arg7[%c3_25, %c0_26, %c0_27] : memref<5x2x128xf32, #tpu.memory_space<vmem>>, vector<1x2x128xf32>
    %59 = vector.shape_cast %58 : vector<1x2x128xf32> to vector<2x128xf32>
    %60 = vector.extract_strided_slice %57 {offsets = [0, 0], sizes = [128, 1], strides = [1, 1]} : vector<128x2xf32> to vector<128x1xf32>
    %61 = vector.extract_strided_slice %59 {offsets = [0, 0], sizes = [1, 128], strides = [1, 1]} : vector<2x128xf32> to vector<1x128xf32>
    %62 = vector.broadcast %60 : vector<128x1xf32> to vector<128x128xf32>
    %63 = vector.broadcast %61 : vector<1x128xf32> to vector<128x128xf32>
    %64 = arith.mulf %62, %63 : vector<128x128xf32>
    %65 = arith.addf %55, %64 : vector<128x128xf32>
    %66 = vector.extract_strided_slice %57 {offsets = [0, 1], sizes = [128, 1], strides = [1, 1]} : vector<128x2xf32> to vector<128x1xf32>
    %67 = vector.extract_strided_slice %59 {offsets = [1, 0], sizes = [1, 128], strides = [1, 1]} : vector<2x128xf32> to vector<1x128xf32>
    %68 = vector.broadcast %66 : vector<128x1xf32> to vector<128x128xf32>
    %69 = vector.broadcast %67 : vector<1x128xf32> to vector<128x128xf32>
    %70 = arith.mulf %68, %69 : vector<128x128xf32>
    %71 = arith.addf %65, %70 : vector<128x128xf32>
    %c0_28 = arith.constant 0 : index
    %c4 = arith.constant 4 : index
    %c0_29 = arith.constant 0 : index
    %72 = vector.load %arg2[%c0_28, %c4, %c0_29] : memref<1x132x2xf32, #tpu.memory_space<vmem>>, vector<1x128x2xf32>
    %73 = vector.shape_cast %72 : vector<1x128x2xf32> to vector<128x2xf32>
    %c4_30 = arith.constant 4 : index
    %c0_31 = arith.constant 0 : index
    %c0_32 = arith.constant 0 : index
    %74 = vector.load %arg7[%c4_30, %c0_31, %c0_32] : memref<5x2x128xf32, #tpu.memory_space<vmem>>, vector<1x2x128xf32>
    %75 = vector.shape_cast %74 : vector<1x2x128xf32> to vector<2x128xf32>
    %76 = vector.extract_strided_slice %73 {offsets = [0, 0], sizes = [128, 1], strides = [1, 1]} : vector<128x2xf32> to vector<128x1xf32>
    %77 = vector.extract_strided_slice %75 {offsets = [0, 0], sizes = [1, 128], strides = [1, 1]} : vector<2x128xf32> to vector<1x128xf32>
    %78 = vector.broadcast %76 : vector<128x1xf32> to vector<128x128xf32>
    %79 = vector.broadcast %77 : vector<1x128xf32> to vector<128x128xf32>
    %80 = arith.mulf %78, %79 : vector<128x128xf32>
    %81 = arith.addf %71, %80 : vector<128x128xf32>
    %82 = vector.extract_strided_slice %73 {offsets = [0, 1], sizes = [128, 1], strides = [1, 1]} : vector<128x2xf32> to vector<128x1xf32>
    %83 = vector.extract_strided_slice %75 {offsets = [1, 0], sizes = [1, 128], strides = [1, 1]} : vector<2x128xf32> to vector<1x128xf32>
    %84 = vector.broadcast %82 : vector<128x1xf32> to vector<128x128xf32>
    %85 = vector.broadcast %83 : vector<1x128xf32> to vector<128x128xf32>
    %86 = arith.mulf %84, %85 : vector<128x128xf32>
    %87 = arith.addf %81, %86 : vector<128x128xf32>
    %88 = math.tanh %87 : vector<128x128xf32>
    %c0_33 = arith.constant 0 : index
    %c0_34 = arith.constant 0 : index
    %89 = vector.load %arg8[%c0_33, %c0_34] : memref<128x1xf32, #tpu.memory_space<vmem>>, vector<128x1xf32>
    %cst_35 = arith.constant dense<0.000000e+00> : vector<128x1xf32>
    %90 = tpu.matmul %88, %89, %cst_35 {dimension_numbers = #tpu.dot_dimension_numbers<[1], [0], [0], [1], [0, 0, 1, 1], [], []>} : vector<128x128xf32>, vector<128x1xf32>, vector<128x1xf32> -> vector<128x1xf32>
    %c0_36 = arith.constant 0 : index
    %c0_37 = arith.constant 0 : index
    %c0_38 = arith.constant 0 : index
    %91 = vector.load %arg5[%c0_36, %c0_37, %c0_38] : memref<1x128x1xf32, #tpu.memory_space<vmem>>, vector<1x128x1xf32>
    %92 = vector.shape_cast %91 : vector<1x128x1xf32> to vector<128x1xf32>
    %93 = arith.addf %90, %92 : vector<128x1xf32>
    %cst_39 = arith.constant dense<0xFF800000> : vector<1xf32>
    %94 = vector.multi_reduction <maximumf>, %93, %cst_39 [0] : vector<128x1xf32> to vector<1xf32>
    %95 = vector.shape_cast %94 : vector<1xf32> to vector<1x1xf32>
    %96 = vector.broadcast %95 : vector<1x1xf32> to vector<128x1xf32>
    %97 = arith.subf %93, %96 : vector<128x1xf32>
    %98 = math.exp %97 : vector<128x1xf32>
    %cst_40 = arith.constant dense<0.000000e+00> : vector<1xf32>
    %99 = vector.multi_reduction <add>, %98, %cst_40 [0] : vector<128x1xf32> to vector<1xf32>
    %100 = vector.shape_cast %99 : vector<1xf32> to vector<1x1xf32>
    %101 = vector.broadcast %100 : vector<1x1xf32> to vector<128x1xf32>
    %102 = arith.divf %98, %101 : vector<128x1xf32>
    %c0_41 = arith.constant 0 : index
    %c0_42 = arith.constant 0 : index
    %c0_43 = arith.constant 0 : index
    %103 = vector.load %arg10[%c0_41, %c0_42, %c0_43] : memref<1x128x1xf32, #tpu.memory_space<vmem>>, vector<1x128x1xf32>
    %104 = vector.shape_cast %103 : vector<1x128x1xf32> to vector<128x1xf32>
    %105 = vector.shape_cast %102 : vector<128x1xf32> to vector<1x128x1xf32>
    tpu.vector_store %arg10[%c0_41, %c0_42, %c0_43], %105 {strides = array<i32>} : memref<1x128x1xf32, #tpu.memory_space<vmem>>, vector<1x128x1xf32>,
    %c0_44 = arith.constant 0 : index
    %c0_45 = arith.constant 0 : index
    %c0_46 = arith.constant 0 : index
    %106 = vector.load %arg4[%c0_44, %c0_45, %c0_46] : memref<1x128x128xf32, #tpu.memory_space<vmem>>, vector<1x128x128xf32>
    %107 = vector.shape_cast %106 : vector<1x128x128xf32> to vector<128x128xf32>
    %108 = vector.broadcast %102 : vector<128x1xf32> to vector<128x128xf32>
    %109 = arith.mulf %108, %107 : vector<128x128xf32>
    %cst_47 = arith.constant dense<0.000000e+00> : vector<128xf32>
    %110 = vector.multi_reduction <add>, %109, %cst_47 [0] : vector<128x128xf32> to vector<128xf32>
    %111 = vector.shape_cast %110 : vector<128xf32> to vector<1x128xf32>
    %c0_48 = arith.constant 0 : index
    %c0_49 = arith.constant 0 : index
    %c0_50 = arith.constant 0 : index
    %112 = vector.load %arg9[%c0_48, %c0_49, %c0_50] : memref<1x1x128xf32, #tpu.memory_space<vmem>>, vector<1x1x128xf32>
    %113 = vector.shape_cast %112 : vector<1x1x128xf32> to vector<1x128xf32>
    %114 = vector.shape_cast %111 : vector<1x128xf32> to vector<1x1x128xf32>
    tpu.vector_store %arg9[%c0_48, %c0_49, %c0_50], %114 {strides = array<i32>} : memref<1x1x128xf32, #tpu.memory_space<vmem>>, vector<1x1x128xf32>,
    return
  }
  func.func @transform_0(%arg0: i32) -> (i32, i32, i32) {
    %c0_i32 = arith.constant 0 : i32
    %c0_i32_0 = arith.constant 0 : i32
    %c0_i32_1 = arith.constant 0 : i32
    return %arg0, %c0_i32, %c0_i32_0 : i32, i32, i32
  }
  func.func @transform_1(%arg0: i32) -> (i32, i32, i32) {
    %c0_i32 = arith.constant 0 : i32
    %c0_i32_0 = arith.constant 0 : i32
    %c0_i32_1 = arith.constant 0 : i32
    return %arg0, %c0_i32, %c0_i32_0 : i32, i32, i32
  }
  func.func @transform_2(%arg0: i32) -> (i32, i32, i32) {
    %c0_i32 = arith.constant 0 : i32
    %c0_i32_0 = arith.constant 0 : i32
    %c0_i32_1 = arith.constant 0 : i32
    return %arg0, %c0_i32, %c0_i32_0 : i32, i32, i32
  }
  func.func @transform_3(%arg0: i32) -> (i32, i32, i32) {
    %c0_i32 = arith.constant 0 : i32
    %c0_i32_0 = arith.constant 0 : i32
    %c0_i32_1 = arith.constant 0 : i32
    return %arg0, %c0_i32, %c0_i32_0 : i32, i32, i32
  }
  func.func @transform_4(%arg0: i32) -> (i32, i32, i32) {
    %c0_i32 = arith.constant 0 : i32
    %c0_i32_0 = arith.constant 0 : i32
    %c0_i32_1 = arith.constant 0 : i32
    return %arg0, %c0_i32, %c0_i32_0 : i32, i32, i32
  }
  func.func @transform_5(%arg0: i32) -> (i32, i32) {
    %c0_i32 = arith.constant 0 : i32
    %c0_i32_0 = arith.constant 0 : i32
    %c0_i32_1 = arith.constant 0 : i32
    return %c0_i32, %c0_i32_0 : i32, i32
  }
  func.func @transform_6(%arg0: i32) -> (i32, i32, i32) {
    %c0_i32 = arith.constant 0 : i32
    %c0_i32_0 = arith.constant 0 : i32
    %c0_i32_1 = arith.constant 0 : i32
    %c0_i32_2 = arith.constant 0 : i32
    return %c0_i32, %c0_i32_0, %c0_i32_1 : i32, i32, i32
  }
  func.func @transform_7(%arg0: i32) -> (i32, i32) {
    %c0_i32 = arith.constant 0 : i32
    %c0_i32_0 = arith.constant 0 : i32
    %c0_i32_1 = arith.constant 0 : i32
    return %c0_i32, %c0_i32_0 : i32, i32
  }
  func.func @transform_8(%arg0: i32) -> (i32, i32, i32) {
    %c0_i32 = arith.constant 0 : i32
    %c0_i32_0 = arith.constant 0 : i32
    %c0_i32_1 = arith.constant 0 : i32
    return %arg0, %c0_i32, %c0_i32_0 : i32, i32, i32
  }
  func.func @transform_9(%arg0: i32) -> (i32, i32, i32) {
    %c0_i32 = arith.constant 0 : i32
    %c0_i32_0 = arith.constant 0 : i32
    %c0_i32_1 = arith.constant 0 : i32
    return %arg0, %c0_i32, %c0_i32_0 : i32, i32, i32
  }
}

</mosaic_0001>

<bundles_post_ra>
// kernel: attention_forward.1
= control target key start
LH: loop header
LB: loop body
LE: loop exit
PB: predicated region body
PF: predicated region fallthrough
CT: control target
= control target key end

     0   :  { %15 = vsyncpa [#allocation3], 0  ;;  %s3829_s0 = inlined_call_operand.vmem [shape: f32[2,1,128], index: 0, kind: input, shape index: {}]   ;;  %s3830_s1 = inlined_call_operand.vmem [shape: f32[2,132,2], index: 1, kind: input, shape index: {}]   ;;  %s3831_s2 = inlined_call_operand.vmem [shape: f32[2,128,128], index: 2, kind: input, shape index: {}]   ;;  %s3832_s3 = inlined_call_operand.vmem [shape: f32[2,128,128], index: 3, kind: input, shape index: {}]   ;;  %s3833_s4 = inlined_call_operand.vmem [shape: f32[2,128,1], index: 4, kind: input, shape index: {}]   ;;  %s3834_s5 = inlined_call_operand.vmem [shape: f32[128,128], index: 5, kind: input, shape index: {}]   ;;  %s3835_s6 = inlined_call_operand.vmem [shape: f32[5,2,128], index: 6, kind: input, shape index: {}]   ;;  %s3836_s7 = inlined_call_operand.vmem [shape: f32[128,1], index: 7, kind: input, shape index: {}]   ;;  %s3837_s8 = inlined_call_operand.hbm [shape: f32[2,1,128], index: 8, kind: output, shape index: {0}]   ;;  %s3838_s9 = inlined_call_operand.vmem [shape: f32[2,128,1], index: 9, kind: output, shape index: {1}]  }
   0x1   :  { %17 = vsyncpa [#allocation3 + $0x1], 0  ;;  %s2519_s30 = smov 0   ;;  %s2521_s10 = smov 0  }
   0x2   :  { %s2523_s11 = smov 0   ;;  %s2525_s12 = smov 0  }
   0x3 LB: > { %s2540_s13 = sadd.s32 4294967295, %s2465_s12   ;;  %s2188_s14 = sadd.s32 4294967294, %s2465_s12   ;;  %s2465_s12 = sphi %s2525_s12, %s3901_s12   ;;  %s2461_s11 = sphi %s2523_s11, %s3900_s11   ;;  %s2457_s10 = sphi %s2521_s10, %s3899_s10   ;;  %s2453_s30 = sphi %s2519_s30, %s3898_s30  }
   0x4   : > { %s2544_s15 = sadd.s32 1, %s2465_s12   ;;  %s223_s16 = sadd.s32 1, %s2461_s11 }
   0x5   : > { %s220_s17 = ssub.s32 %s2465_s12, %s2544_s15  ;;  %p233_p0 = scmp.ne.s32.totalorder %s2461_s11, %s2457_s10 }
   0x6   : > { %p221_p1 = scmp.eq.s32.totalorder %s220_s17, 0  ;;  %p234_p2 = scmp.eq.s32.totalorder %s2540_s13, 1 }
   0x7   : > { %p239_p3 = scmp.ne.s32.totalorder %s2457_s10, %s2453_s30  ;;  %p240_p4 = scmp.eq.s32.totalorder %s2188_s14, 1 }
   0x8   : > { %s2555_s18 = scalar_select %p221_p1, %s2461_s11, %s223_s16  }
   0x9   : > { %p2557_p5 = por %p234_p2, %p233_p0  ;;  %p2561_p6 = por %p240_p4, %p239_p3 }
   0xa   : > { %p2191_p7 = scmp.ge.s32.totalorder %s2465_s12, 1  ;;  %p331_p8 = scmp.lt.s32.totalorder %s2465_s12, 3 }
   0xc   : > { %p332_p9 = pnand %p2191_p7, %p331_p8 }
   0xe   : > { %335 = sbr.rel (%p332_p9) target bundleno = 1025 (0x401), region = 52 }
  0x13   : > { %v433_v0 = vld [vmem:[%s3834_s5 + $0x78] sm:$0xff]  ;;  %v432_v1 = vld [vmem:[%s3834_s5 + $0x70] sm:$0xff]  ;;  %p389_p10 = scmp.lt.s32.totalorder %s2540_s13, 1  ;;  %v3841_v2 = vmov 0   ;;  %v431_v3 = vld [vmem:[%s3834_s5 + $0x68] sm:$0xff]  ;;  %v3839_v34 = vmov 1  }
  0x14   : > { %434 = vmatpush.msra.mxu0 %v433_v0  ;;  %2303 = vset.pattern.permute.xlu2 %v3841_v2  ;;  %v430_v4 = vld [vmem:[%s3834_s5 + $0x60] sm:$0xff]  ;;  %v429_v5 = vld [vmem:[%s3834_s5 + $0x58] sm:$0xff]  ;;  %v428_v9 = vld [vmem:[%s3834_s5 + $0x50] sm:$0xff]  ;;  %vm1739_vm0 = vcmask 7168  }
  0x15   : > { %2302 = vset.pattern.permute.xlu1 %v3841_v2  ;;  %2301 = vset.pattern.permute.xlu0 %v3841_v2  ;;  %s2581_s27 = scalar_select %p389_p10, %s2540_s13, 1  ;;  %v427_v10 = vld [vmem:[%s3834_s5 + $0x48] sm:$0xff]  ;;  %v426_v11 = vld [vmem:[%s3834_s5 + $0x40] sm:$0xff]  ;;  %v425_v15 = vld [vmem:[%s3834_s5 + $0x38] sm:$0xff] }
  0x16   : > { %435 = vmatpush.msra.mxu0 %v432_v1  ;;  %v424_v16 = vld [vmem:[%s3834_s5 + $0x30] sm:$0xff]  ;;  %v423_v17 = vld [vmem:[%s3834_s5 + $0x28] sm:$0xff]  ;;  %v422_v18 = vld [vmem:[%s3834_s5 + $0x20] sm:$0xff] }
  0x17   : > { %s2259_s14 = smul.u32 136, %s2581_s27  ;;  %v421_v22 = vld [vmem:[%s3834_s5 + $0x18] sm:$0xff]  ;;  %v420_v23 = vld [vmem:[%s3834_s5 + $0x10] sm:$0xff]  ;;  %v419_v24 = vld [vmem:[%s3834_s5 + $0x8] sm:$0xff]  ;;  %s391_s26 = scalar_lea.vmem %s3829_s0, %s2581_s27 }
  0x18   : > { %436 = vmatpush.msra.mxu0 %v431_v3  ;;  %v418_v25 = vld [vmem:[%s3834_s5] sm:$0xff] }
  0x19   : > { %s2590_s21 = scalar_lea.vmem %s3830_s1, %s2259_s14  ;;  %v417_v29 = vld [vmem:[%s391_s26] sm:$0x1]  ;;  %s2785_s14 = sshll.u32 %s2581_s27, 7 }
  0x1a   : > { %437 = vmatpush.msra.mxu0 %v430_v4  ;;  %v2596_v6 = vld [vmem:[%s2590_s21 + $0x20] sm:$0xff]  ;;  %v2599_v7 = vld [vmem:[%s2590_s21 + $0x10] sm:$0xff]  ;;  %v492_v12 = vld [vmem:[%s2590_s21 + $0x28] sm:$0xff]  ;;  %s2801_s24 = scalar_lea.vmem %s3831_s2, %s2785_s14  ;;  %s3561_s25 = scalar_lea.vmem %s3833_s4, %s2785_s14 }
  0x1b   : > { %v487_v8 = vld [vmem:[%s2590_s21] sm:$0xff]  ;;  %526 = vperm.xlu2 %2303, %v2596_v6   ;;  %516 = vperm.xlu1 %2302, %v2599_v7   ;;  %v490_v13 = vld [vmem:[%s2590_s21 + $0x18] sm:$0xff]  ;;  %v488_v14 = vld [vmem:[%s2590_s21 + $0x8] sm:$0xff]  ;;  %s3728_s29 = scalar_lea.vmem %s3838_s9, %s2785_s14  ;;  %s3779_s22 = scalar_lea.vmem %s3832_s3, %s2785_s14 }
  0x1c   : > { %506 = vperm.xlu0 %2301, %v487_v8   ;;  %438 = vmatpush.msra.mxu0 %v429_v5  ;;  %v495_v19 = vld [vmem:[%s2590_s21 + $0x40] sm:$0xff]  ;;  %v2630_v20 = vld [vmem:[%s2590_s21 + $0x38] sm:$0xff]  ;;  %v493_v21 = vld [vmem:[%s2590_s21 + $0x30] sm:$0xff]  ;;  %s380_s14 = sand.u32 1, %s2457_s10  }
  0x1d   : > { %v498_v26 = vld [vmem:[%s2590_s21 + $0x58] sm:$0xff]  ;;  %v2652_v27 = vld [vmem:[%s2590_s21 + $0x50] sm:$0xff]  ;;  %v496_v28 = vld [vmem:[%s2590_s21 + $0x48] sm:$0xff]  ;;  %s381_s27 = scalar_lea.vmem [#allocation2], %s380_s14  ;;  %s2043_s28 = scalar_lea.sflag [#allocation3], %s380_s14 }
  0x1e   : > { %439 = vmatpush.msra.mxu0 %v428_v9  ;;  %v501_v30 = vld [vmem:[%s2590_s21 + $0x70] sm:$0xff]  ;;  %v2658_v31 = vld [vmem:[%s2590_s21 + $0x68] sm:$0xff]  ;;  %v499_v32 = vld [vmem:[%s2590_s21 + $0x60] sm:$0xff] }
  0x1f   : > { %v502_v33 = vld [vmem:[%s2590_s21 + $0x78] sm:$0xff]  ;;  %v2666_v35 = vld [vmem:[%s2590_s21 + $0x1] sm:$0xff]  ;;  %v2671_v36 = vld [vmem:[%s2590_s21 + $0x29] sm:$0xff] }
  0x20   : > { %440 = vmatpush.msra.mxu0 %v427_v10  ;;  %v2675_v37 = vld [vmem:[%s2590_s21 + $0x41] sm:$0xff]  ;;  %v2679_v38 = vld [vmem:[%s2590_s21 + $0x59] sm:$0xff]  ;;  %v2683_v39 = vld [vmem:[%s2590_s21 + $0x71] sm:$0xff] }
  0x21   : > { %v2687_v40 = vld [vmem:[%s2590_s21 + $0x12] sm:$0xff]  ;;  %v2691_v42 = vld [vmem:[%s2590_s21 + $0x9] sm:$0xff]  ;;  %v2700_v44 = vld [vmem:[%s2590_s21 + $0x3a] sm:$0xff] }
  0x22   : > { %441 = vmatpush.msra.mxu0 %v426_v11  ;;  %v716_v41 = vld [vmem:[%s2590_s21 + $0x11] sm:$0xff]  ;;  %v718_v45 = vld [vmem:[%s2590_s21 + $0x21] sm:$0xff]  ;;  %v717_v46 = vld [vmem:[%s2590_s21 + $0x19] sm:$0xff] }
  0x23   : > { %531 = vperm.xlu2 %2303, %v492_v12   ;;  %521 = vperm.xlu1 %2302, %v490_v13   ;;  %v2708_v48 = vld [vmem:[%s2590_s21 + $0x52] sm:$0xff]  ;;  %v2722_v52 = vld [vmem:[%s2590_s21 + $0x6a] sm:$0xff]  ;;  %v2744_v60 = vld [vmem:[%s2590_s21 + $0x61] sm:$0xff] }
  0x24   : > { %511 = vperm.xlu0 %2301, %v488_v14   ;;  %442 = vmatpush.msra.mxu0 %v425_v15  ;;  %v2711_v49 = vld [vmem:[%s2590_s21 + $0x39] sm:$0xff]  ;;  %v2714_v50 = vld [vmem:[%s2590_s21 + $0x31] sm:$0xff]  ;;  %v2728_v54 = vld [vmem:[%s2590_s21 + $0x49] sm:$0xff] }
  0x25   : > { %v2725_v53 = vld [vmem:[%s2590_s21 + $0x51] sm:$0xff]  ;;  %v2741_v59 = vld [vmem:[%s2590_s21 + $0x69] sm:$0xff]  ;;  %v2759_v1 = vld [vmem:[%s2590_s21 + $0x79] sm:$0xff] }
  0x26   : > { %443 = vmatpush.msra.mxu0 %v424_v16  ;;  %v2738_v58 = vld [vmem:[%s2590_s21 + $0xb] sm:$0xff]  ;;  %v2756_v0 = vld [vmem:[%s2590_s21 + $0x33] sm:$0xff]  ;;  %v2781_v11 = vld [vmem:[%s2590_s21 + $0x63] sm:$0xff] }
  0x27   : > { %3852 = vst [vmem:[#allocation5_spill] sm:$0xff] %v2738_v58 }
  0x28   : > { %444 = vmatpush.msra.mxu0 %v423_v17  ;;  %3854 = vst [vmem:[#allocation7_spill] sm:$0xff] %v2756_v0  ;;  %v2806_v17 = vld [vmem:[%s2590_s21 + $0xc] sm:$0xff] }
  0x29   : > { %3859 = vst [vmem:[#allocation12_spill] sm:$0xff] %v2781_v11 }
  0x2a   : > { %445 = vmatpush.msra.mxu0 %v422_v18  ;;  %3862 = vst [vmem:[#allocation15_spill] sm:$0xff] %v2806_v17 }
  0x2b   : > { %546 = vperm.xlu2 %2303, %v495_v19   ;;  %541 = vperm.xlu1 %2302, %v2630_v20  }
  0x2c   : > { %536 = vperm.xlu0 %2301, %v493_v21   ;;  %446 = vmatpush.msra.mxu0 %v421_v22  ;;  %v454_v22 = vld [vmem:[%s2801_s24] sm:$0xff] }
  0x2e   : > { %447 = vmatpush.msra.mxu0 %v420_v23 }
  0x30   : > { %448 = vmatpush.msra.mxu0 %v419_v24 }
  0x32   : > { %449 = vmatpush.msra.mxu0 %v418_v25  ;;  %v457_v25 = vld [vmem:[%s2801_s24 + $0x18] sm:$0xff] }
  0x33   : > { %561 = vperm.xlu2 %2303, %v498_v26   ;;  %556 = vperm.xlu1 %2302, %v2652_v27  }
  0x34   : > { %551 = vperm.xlu0 %2301, %v496_v28   ;;  %450 = vmatmul.f32.vlgmr.msra.gmra.mxu0 %v417_v29  ;;  %v458_v29 = vld [vmem:[%s2801_s24 + $0x20] sm:$0xff] }
  0x3b   : > { %576 = vperm.xlu2 %2303, %v501_v30   ;;  %571 = vperm.xlu1 %2302, %v2658_v31  }
  0x3c   : > { %566 = vperm.xlu0 %2301, %v499_v32  }
  0x43   : > { %2305 = vset.pattern.permute.xlu2 %v3839_v34  ;;  %2304 = vset.pattern.permute.xlu1 %v3839_v34 }
  0x44   : > { %581 = vperm.xlu0 %2301, %v502_v33   ;;  %622 = vperm.xlu2 %2305, %v488_v14  }
  0x45   : > { %618 = vperm.xlu1 %2304, %v487_v8  }
  0x4c   : > { %734 = vperm.xlu0 %2301, %v2666_v35   ;;  %634 = vperm.xlu2 %2305, %v2596_v6   ;;  %v2772_v6 = vld [vmem:[%s2590_s21 + $0x4b] sm:$0xff] }
  0x4d   : > { %630 = vperm.xlu1 %2304, %v490_v13   ;;  %3857 = vst [vmem:[#allocation10_spill] sm:$0xff] %v2772_v6 }
  0x54   : > { %759 = vperm.xlu0 %2301, %v2671_v36   ;;  %642 = vperm.xlu2 %2305, %v493_v21   ;;  %v463_v21 = vld [vmem:[%s2801_s24 + $0x48] sm:$0xff] }
  0x55   : > { %638 = vperm.xlu1 %2304, %v492_v12   ;;  %v503_v12 = vld [vmem:[%s3835_s6] sm:$0x3] }
  0x56   : > { %v2803_v16 = vperm.slane %v503_v12, 0 }
  0x5c   : > { %774 = vperm.xlu0 %2301, %v2675_v37   ;;  %654 = vperm.xlu2 %2305, %v496_v28   ;;  %v462_v28 = vld [vmem:[%s2801_s24 + $0x40] sm:$0xff] }
  0x5d   : > { %650 = vperm.xlu1 %2304, %v495_v19   ;;  %v469_v19 = vld [vmem:[%s2801_s24 + $0x78] sm:$0xff] }
  0x64   : > { %789 = vperm.xlu0 %2301, %v2679_v38   ;;  %666 = vperm.xlu2 %2305, %v499_v32  }
  0x65   : > { %662 = vperm.xlu1 %2304, %v498_v26   ;;  %v459_v26 = vld [vmem:[%s2801_s24 + $0x28] sm:$0xff] }
  0x6c   : > { %804 = vperm.xlu0 %2301, %v2683_v39   ;;  %678 = vperm.xlu2 %2305, %v502_v33  }
  0x6d   : > { %674 = vperm.xlu1 %2304, %v501_v30  }
  0x74   : > { %972 = vperm.xlu0 %2301, %v2687_v40   ;;  %2307 = vset.pattern.permute.xlu2 %v3841_v2 }
  0x75   : > { %2306 = vset.pattern.permute.xlu1 %v3841_v2  ;;  %v2696_v43 = vpop.permute.xlu2 %526  ;;  %744 = vperm.xlu2 %2307, %v716_v41  }
  0x76   : > { %739 = vperm.xlu1 %2306, %v2691_v42  }
  0x7c   : > { %997 = vperm.xlu0 %2301, %v2700_v44  }
  0x7d   : > { %v2705_v47 = vpop.permute.xlu2 %531  ;;  %754 = vperm.xlu2 %2307, %v718_v45  }
  0x7e   : > { %749 = vperm.xlu1 %2306, %v717_v46  }
  0x84   : > { %1012 = vperm.xlu0 %2301, %v2708_v48  }
  0x85   : > { %v2717_v51 = vpop.permute.xlu2 %546  ;;  %769 = vperm.xlu2 %2307, %v2711_v49  }
  0x86   : > { %764 = vperm.xlu1 %2306, %v2714_v50  }
  0x8c   : > { %1027 = vperm.xlu0 %2301, %v2722_v52  }
  0x8d   : > { %v2731_v55 = vpop.permute.xlu2 %561  ;;  %v2733_v56 = vpop.permute.xlu1 %516  ;;  %784 = vperm.xlu2 %2307, %v2725_v53  }
  0x8e   : > { %779 = vperm.xlu1 %2306, %v2728_v54   ;;  %v507_v57 = vpop.permute.xlu0 %506 }
  0x94   : > { %1195 = vperm.xlu0 %2301, %v2738_v58  }
  0x95   : > { %v2747_v61 = vpop.permute.xlu2 %576  ;;  %v2749_v62 = vpop.permute.xlu1 %521  ;;  %799 = vperm.xlu2 %2307, %v2741_v59  }
  0x96   : > { %794 = vperm.xlu1 %2306, %v2744_v60   ;;  %v2753_v63 = vpop.permute.xlu0 %511 }
  0x97   : > { %3853 = vst [vmem:[#allocation6_spill] sm:$0xff] %v2753_v63 }
  0x9c   : > { %1220 = vperm.xlu0 %2301, %v2756_v0  }
  0x9d   : > { %v2762_v3 = vpop.permute.xlu1 %541  ;;  %2308 = vset.pattern.permute.xlu2 %v3839_v34 }
  0x9e   : > { %809 = vperm.xlu1 %2306, %v2759_v1   ;;  %v2766_v4 = vpop.permute.xlu0 %536  ;;  %846 = vperm.xlu2 %2308, %v2666_v35   ;;  %v2769_v5 = vpop.permute.xlu2 %622 }
  0x9f   : > { %3855 = vst [vmem:[#allocation8_spill] sm:$0xff] %v2766_v4 }
  0xa0   : > { %3856 = vst [vmem:[#allocation9_spill] sm:$0xff] %v2769_v5 }
  0xa4   : > { %1235 = vperm.xlu0 %2301, %v2772_v6   ;;  %v2948_v6 = vld [vmem:[%s2590_s21 + $0x42] sm:$0xff] }
  0xa5   : > { %v2775_v8 = vpop.permute.xlu1 %556 }
  0xa6   : > { %3858 = vst [vmem:[#allocation11_spill] sm:$0xff] %v2775_v8  ;;  %2309 = vset.pattern.permute.xlu1 %v3839_v34  ;;  %v552_v9 = vpop.permute.xlu0 %551  ;;  %858 = vperm.xlu2 %2308, %v717_v46   ;;  %v2778_v10 = vpop.permute.xlu2 %634 }
  0xa7   : > { %854 = vperm.xlu1 %2309, %v716_v41   ;;  %v594_v23 = vmul.f32 %v2803_v16, %v552_v9 }
  0xac   : > { %1250 = vperm.xlu0 %2301, %v2781_v11   ;;  %v2895_v11 = vld [vmem:[%s2590_s21 + $0x2] sm:$0xff] }
  0xad   : > { %v2790_v13 = vpop.permute.xlu1 %571 }
  0xae   : > { %3860 = vst [vmem:[#allocation13_spill] sm:$0xff] %v2790_v13  ;;  %v2792_v14 = vpop.permute.xlu0 %566  ;;  %866 = vperm.xlu2 %2308, %v2671_v36   ;;  %v2795_v15 = vpop.permute.xlu2 %642  ;;  %v2942_v13 = vld [vmem:[%s2590_s21 + $0x4a] sm:$0xff] }
  0xaf   : > { %3861 = vst [vmem:[#allocation14_spill] sm:$0xff] %v2795_v15  ;;  %862 = vperm.xlu1 %2309, %v718_v45   ;;  %v3866_v15 = vmov 0  }
  0xb1   : > { %v451_v18 = vpop.f32.mrf.mxu0 }
  0xb2   : > { %v2812_v24 = vperm.slane %v451_v18, 0 }
  0xb4   : > { %1423 = vperm.xlu0 %2301, %v2806_v17   ;;  %v486_v30 = vadd.f32 %v2812_v24, %v469_v19  ;;  %v480_v32 = vadd.f32 %v2812_v24, %v463_v21  ;;  %v471_v33 = vadd.f32 %v2812_v24, %v454_v22  ;;  %v2823_v35 = vadd.f32 %v2812_v24, %v457_v25  ;;  %v468_v19 = vld [vmem:[%s2801_s24 + $0x70] sm:$0xff] }
  0xb5   : > { %v476_v36 = vadd.f32 %v2812_v24, %v459_v26  ;;  %v479_v41 = vadd.f32 %v2812_v24, %v462_v28  ;;  %v2833_v18 = vadd.f32 %v2812_v24, %v458_v29  ;;  %v585_v21 = vmul.f32 %v2803_v16, %v507_v57  ;;  %v2842_v26 = vld [vmem:[%s3835_s6 + $0x2] sm:$0x3]  ;;  %v467_v57 = vld [vmem:[%s2801_s24 + $0x68] sm:$0xff] }
  0xb6   : > { %v582_v45 = vpop.permute.xlu0 %581  ;;  %878 = vperm.xlu2 %2308, %v2675_v37   ;;  %v2828_v46 = vpop.permute.xlu2 %654  ;;  %v2830_v9 = vadd.f32 %v594_v23, %v480_v32  ;;  %v464_v37 = vld [vmem:[%s2801_s24 + $0x50] sm:$0xff]  ;;  %v2845_v28 = vperm.slane %v503_v12, 1  ;;  %v2850_v29 = vld [vmem:[%s2590_s21 + $0x3c] sm:$0xff]  ;;  %v2853_v32 = vadd.f32 %v2812_v24, %v468_v19  ;;  %v2858_v34 = vperm.slane %v2842_v26, 0 }
  0xb7   : > { %v600_v22 = vmul.f32 %v2803_v16, %v582_v45  ;;  %874 = vperm.xlu1 %2309, %v2711_v49   ;;  %v619_v25 = vpop.permute.xlu1 %618  ;;  %v601_v45 = vadd.f32 %v585_v21, %v471_v33  ;;  %v2861_v2 = vadd.f32 %v2812_v24, %v464_v37  ;;  %v2865_v12 = vadd.f32 %v2812_v24, %v467_v57  ;;  %v2877_v37 = vld [vmem:[%s2590_s21 + $0x6c] sm:$0xff] }
  0xb8   : > { %v682_v49 = vmul.f32 %v2845_v28, %v619_v25  ;;  %3865 = vst [vmem:[#allocation18_spill] sm:$0xff] %v2877_v37 }
  0xb9   : > { %v2847_v23 = vadd.f32 %v600_v22, %v486_v30  ;;  %3863 = vst [vmem:[#allocation16_spill] sm:$0xff] %v2861_v2  ;;  %v588_v2 = vmul.f32 %v2803_v16, %v2749_v62  ;;  %v597_v62 = vmul.f32 %v2803_v16, %v2792_v14 }
  0xba   : > { %3864 = vst [vmem:[#allocation17_spill] sm:$0xff] %v2865_v12  ;;  %v698_v22 = vadd.f32 %v682_v49, %v601_v45 }
  0xbb   : > { %v604_v8 = vadd.f32 %v588_v2, %v2823_v35 }
  0xbc   : > { %1453 = vperm.xlu0 %2301, %v2850_v29  }
  0xbe   : > { %v735_v30 = vpop.permute.xlu0 %734  ;;  %890 = vperm.xlu2 %2308, %v2679_v38   ;;  %v2868_v19 = vpop.permute.xlu2 %666  ;;  %v590_v38 = vmul.f32 %v2803_v16, %v2705_v47 }
  0xbf   : > { %v813_v33 = vmul.f32 %v2858_v34, %v735_v30  ;;  %886 = vperm.xlu1 %2309, %v2725_v53   ;;  %v2872_v21 = vpop.permute.xlu1 %630 }
  0xc0   : > { %v606_v30 = vadd.f32 %v590_v38, %v476_v36 }
  0xc1   : > { %v2874_v25 = vadd.f32 %v813_v33, %v698_v22  ;;  %v1412_v33 = vld [vmem:[%s2590_s21 + $0x74] sm:$0xff] }
  0xc4   : > { %1483 = vperm.xlu0 %2301, %v2877_v37   ;;  %v2890_v37 = vld [vmem:[%s2590_s21 + $0xa] sm:$0xff] }
  0xc6   : > { %v760_v57 = vpop.permute.xlu0 %759  ;;  %902 = vperm.xlu2 %2308, %v2683_v39   ;;  %v2883_v45 = vpop.permute.xlu2 %678  ;;  %v593_v39 = vmul.f32 %v2803_v16, %v2717_v51 }
  0xc7   : > { %898 = vperm.xlu1 %2309, %v2741_v59   ;;  %v639_v53 = vpop.permute.xlu1 %638  ;;  %v818_v49 = vmul.f32 %v2858_v34, %v760_v57 }
  0xc8   : > { %v687_v22 = vmul.f32 %v2845_v28, %v639_v53  ;;  %v609_v57 = vadd.f32 %v593_v39, %v479_v41  ;;  %v2926_v39 = vld [vmem:[%s2590_s21 + $0x32] sm:$0xff] }
  0xca   : > { %v703_v17 = vadd.f32 %v687_v22, %v606_v30  ;;  %v2909_v30 = vld [vmem:[%s2590_s21 + $0x22] sm:$0xff] }
  0xcc   : > { %1488 = vperm.xlu0 %2301, %v1412_v33   ;;  %v2892_v47 = vadd.f32 %v818_v49, %v703_v17  ;;  %v3867_v49 = vmov 1   ;;  %v2915_v33 = vld [vmem:[%s2590_s21 + $0x1a] sm:$0xff] }
  0xce   : > { %v775_v59 = vpop.permute.xlu0 %774  ;;  %2311 = vset.pattern.permute.xlu2 %v3866_v15 }
  0xcf   : > { %2310 = vset.pattern.permute.xlu1 %v3866_v15  ;;  %v651_v36 = vpop.permute.xlu1 %650  ;;  %967 = vperm.xlu2 %2311, %v2890_v37   ;;  %v2902_v38 = vpop.permute.xlu2 %744  ;;  %v821_v17 = vmul.f32 %v2858_v34, %v775_v59 }
  0xd0   : > { %v690_v53 = vmul.f32 %v2845_v28, %v651_v36  ;;  %962 = vperm.xlu1 %2310, %v2895_v11   ;;  %v2930_v36 = vld [vmem:[%s2590_s21 + $0x2a] sm:$0xff] }
  0xd2   : > { %v706_v51 = vadd.f32 %v690_v53, %v609_v57 }
  0xd4   : > { %2327 = vset.pattern.permute.xlu0 %v3867_v49  ;;  %v2911_v22 = vadd.f32 %v821_v17, %v706_v51 }
  0xd5   : > { %626 = vperm.xlu0 %2327, %v2599_v7   ;;  %v599_v7 = vmul.f32 %v2803_v16, %v2747_v61 }
  0xd6   : > { %v2917_v4 = vpop.permute.xlu0 %789 }
  0xd7   : > { %v2919_v59 = vpop.permute.xlu1 %662  ;;  %982 = vperm.xlu2 %2311, %v2909_v30   ;;  %v2922_v41 = vpop.permute.xlu2 %754  ;;  %v615_v5 = vadd.f32 %v599_v7, %v2853_v32 }
  0xd8   : > { %977 = vperm.xlu1 %2310, %v2915_v33  }
  0xdd   : > { %646 = vperm.xlu0 %2327, %v2630_v20  }
  0xde   : > { %v805_v17 = vpop.permute.xlu0 %804 }
  0xdf   : > { %v675_v57 = vpop.permute.xlu1 %674  ;;  %992 = vperm.xlu2 %2311, %v2926_v39   ;;  %v2935_v53 = vpop.permute.xlu2 %769  ;;  %v827_v51 = vmul.f32 %v2858_v34, %v805_v17 }
  0xe0   : > { %v696_v12 = vmul.f32 %v2845_v28, %v675_v57  ;;  %987 = vperm.xlu1 %2310, %v2930_v36  }
  0xe2   : > { %v712_v20 = vadd.f32 %v696_v12, %v615_v5  ;;  %v2959_v5 = vld [vmem:[%s2590_s21 + $0x62] sm:$0xff]  ;;  %v2963_v12 = vld [vmem:[%s2590_s21 + $0x5a] sm:$0xff] }
  0xe4   : > { %v2944_v61 = vadd.f32 %v827_v51, %v712_v20  ;;  %v2972_v51 = vld [vmem:[%s2590_s21 + $0x7a] sm:$0xff]  ;;  %v2976_v20 = vld [vmem:[%s2590_s21 + $0x72] sm:$0xff] }
  0xe5   : > { %658 = vperm.xlu0 %2327, %v2652_v27  }
  0xe6   : > { %v2950_v63 = vpop.permute.xlu0 %972 }
  0xe7   : > { %1007 = vperm.xlu2 %2311, %v2942_v13   ;;  %v2953_v32 = vpop.permute.xlu2 %784 }
  0xe8   : > { %3868 = vst [vmem:[#allocation19_spill] sm:$0xff] %v2953_v32  ;;  %1002 = vperm.xlu1 %2310, %v2948_v6   ;;  %v2956_v7 = vpop.permute.xlu1 %739 }
  0xe9   : > { %3869 = vst [vmem:[#allocation20_spill] sm:$0xff] %v2956_v7 }
  0xed   : > { %670 = vperm.xlu0 %2327, %v2658_v31   ;;  %v2979_v31 = vperm.slane %v2842_v26, 1 }
  0xee   : > { %v2965_v27 = vpop.permute.xlu0 %997 }
  0xef   : > { %3870 = vst [vmem:[#allocation21_spill] sm:$0xff] %v2965_v27  ;;  %1022 = vperm.xlu2 %2311, %v2959_v5   ;;  %v2968_v17 = vpop.permute.xlu2 %799  ;;  %v466_v27 = vld [vmem:[%s2801_s24 + $0x60] sm:$0xff] }
  0xf0   : > { %3871 = vst [vmem:[#allocation22_spill] sm:$0xff] %v2968_v17  ;;  %1017 = vperm.xlu1 %2310, %v2963_v12   ;;  %v750_v57 = vpop.permute.xlu1 %749 }
  0xf5   : > { %850 = vperm.xlu0 %2327, %v2691_v42   ;;  %v685_v42 = vmul.f32 %v2845_v28, %v2872_v21  ;;  %v483_v21 = vadd.f32 %v2812_v24, %v466_v27 }
  0xf6   : > { %v2981_v7 = vpop.permute.xlu0 %1012 }
  0xf7   : > { %3872 = vst [vmem:[#allocation23_spill] sm:$0xff] %v2981_v7  ;;  %1037 = vperm.xlu2 %2311, %v2972_v51   ;;  %v691_v7 = vmul.f32 %v2845_v28, %v2828_v46  ;;  %v701_v0 = vadd.f32 %v685_v42, %v604_v8  ;;  %v613_v27 = vadd.f32 %v597_v62, %v483_v21 }
  0xf8   : > { %1032 = vperm.xlu1 %2310, %v2976_v20   ;;  %v2985_v17 = vpop.permute.xlu1 %764  ;;  %v847_v58 = vpop.permute.xlu2 %846 }
  0xf9   : > { %3873 = vst [vmem:[#allocation24_spill] sm:$0xff] %v2985_v17  ;;  %v910_v32 = vmul.f32 %v2979_v31, %v847_v58  ;;  %v816_v17 = vmul.f32 %v2858_v34, %v750_v57  ;;  %v707_v35 = vadd.f32 %v691_v7, %v2830_v9  ;;  %v694_v57 = vmul.f32 %v2845_v28, %v2868_v19  ;;  %v465_v19 = vld [vmem:[%s2801_s24 + $0x58] sm:$0xff] }
  0xfa   : > { %v482_v21 = vadd.f32 %v2812_v24, %v465_v19 }
  0xfb   : > { %v2993_v26 = vadd.f32 %v910_v32, %v2874_v25  ;;  %v832_v25 = vadd.f32 %v816_v17, %v701_v0  ;;  %v710_v7 = vadd.f32 %v694_v57, %v613_v27 }
  0xfd   : > { %870 = vperm.xlu0 %2327, %v2714_v50  }
  0xfe   : > { %v3001_v58 = vpop.permute.xlu0 %1027 }
  0xff   : > { %2313 = vset.pattern.permute.xlu2 %v3867_v49 }
 0x100   : > { %2312 = vset.pattern.permute.xlu1 %v3867_v49  ;;  %v780_v46 = vpop.permute.xlu1 %779  ;;  %1082 = vperm.xlu2 %2313, %v2687_v40   ;;  %v859_v2 = vpop.permute.xlu2 %858 }
 0x101   : > { %v822_v50 = vmul.f32 %v2858_v34, %v780_v46  ;;  %v913_v8 = vmul.f32 %v2979_v31, %v859_v2  ;;  %1078 = vperm.xlu1 %2312, %v2890_v37   ;;  %v596_v46 = vmul.f32 %v2803_v16, %v2731_v55 }
 0x103   : > { %v3013_v32 = vadd.f32 %v822_v50, %v707_v35  ;;  %v3015_v14 = vadd.f32 %v913_v8, %v832_v25  ;;  %v693_v35 = vmul.f32 %v2845_v28, %v2919_v59  ;;  %v612_v25 = vadd.f32 %v596_v46, %v482_v21 }
 0x105   : > { %882 = vperm.xlu0 %2327, %v2728_v54   ;;  %v697_v54 = vmul.f32 %v2845_v28, %v2883_v45  ;;  %v709_v8 = vadd.f32 %v693_v35, %v612_v25  ;;  %v3123_v35 = vld [vmem:[%s2590_s21 + $0x2b] sm:$0xff] }
 0x106   : > { %v3020_v40 = vpop.permute.xlu0 %1195 }
 0x108   : > { %v795_v0 = vpop.permute.xlu1 %794  ;;  %1090 = vperm.xlu2 %2313, %v2909_v30   ;;  %v867_v9 = vpop.permute.xlu2 %866 }
 0x109   : > { %v825_v37 = vmul.f32 %v2858_v34, %v795_v0  ;;  %v915_v17 = vmul.f32 %v2979_v31, %v867_v9  ;;  %1086 = vperm.xlu1 %2312, %v2915_v33  }
 0x10b   : > { %v3026_v42 = vadd.f32 %v825_v37, %v710_v7  ;;  %v3029_v62 = vadd.f32 %v915_v17, %v2892_v47  ;;  %v713_v47 = vadd.f32 %v697_v54, %v2847_v23  ;;  %v3103_v54 = vld [vmem:[%s2590_s21 + $0x1b] sm:$0xff] }
 0x10d   : > { %894 = vperm.xlu0 %2327, %v2744_v60  }
 0x10e   : > { %v3035_v30 = vpop.permute.xlu0 %1220 }
 0x110   : > { %v810_v2 = vpop.permute.xlu1 %809  ;;  %1102 = vperm.xlu2 %2313, %v2700_v44   ;;  %v879_v33 = vpop.permute.xlu2 %878  ;;  %v824_v44 = vmul.f32 %v2858_v34, %v2917_v4 }
 0x111   : > { %v828_v45 = vmul.f32 %v2858_v34, %v810_v2  ;;  %v918_v60 = vmul.f32 %v2979_v31, %v879_v33  ;;  %1098 = vperm.xlu1 %2312, %v2926_v39  }
 0x112   : > { %v840_v27 = vadd.f32 %v824_v44, %v709_v8  ;;  %v3141_v8 = vld [vmem:[%s2590_s21 + $0x3b] sm:$0xff] }
 0x113   : > { %v3047_v50 = vadd.f32 %v828_v45, %v713_v47  ;;  %v3050_v55 = vadd.f32 %v918_v60, %v2911_v22  ;;  %v589_v22 = vmul.f32 %v2803_v16, %v2696_v43  ;;  %v3126_v45 = vld [vmem:[%s2590_s21 + $0x23] sm:$0xff] }
 0x115   : > { %906 = vperm.xlu0 %2327, %v2759_v1   ;;  %v686_v1 = vmul.f32 %v2845_v28, %v2778_v10  ;;  %v605_v4 = vadd.f32 %v589_v22, %v2833_v18  ;;  %v1181_v22 = vld [vmem:[%s2590_s21 + $0x5b] sm:$0xff] }
 0x116   : > { %v3055_v23 = vpop.permute.xlu0 %1235 }
 0x118   : > { %1114 = vperm.xlu2 %2313, %v2708_v48   ;;  %v891_v59 = vpop.permute.xlu2 %890  ;;  %v817_v48 = vmul.f32 %v2858_v34, %v2922_v41 }
 0x119   : > { %v921_v39 = vmul.f32 %v2979_v31, %v891_v59  ;;  %1110 = vperm.xlu1 %2312, %v2942_v13   ;;  %v3060_v57 = vpop.permute.xlu1 %854  ;;  %v702_v13 = vadd.f32 %v686_v1, %v605_v4 }
 0x11b   : > { %v3064_v0 = vadd.f32 %v921_v39, %v840_v27  ;;  %v833_v10 = vadd.f32 %v817_v48, %v702_v13  ;;  %v456_v27 = vld [vmem:[%s2801_s24 + $0x10] sm:$0xff]  ;;  %v587_v48 = vmul.f32 %v2803_v16, %v2733_v56 }
 0x11d   : > { %1074 = vperm.xlu0 %2327, %v2895_v11  }
 0x11e   : > { %v3072_v9 = vpop.permute.xlu0 %1250 }
 0x120   : > { %1126 = vperm.xlu2 %2313, %v2722_v52   ;;  %v903_v7 = vpop.permute.xlu2 %902  ;;  %v3085_v52 = vld [vmem:[%s2590_s21 + $0x3] sm:$0xff] }
 0x121   : > { %v924_v43 = vmul.f32 %v2979_v31, %v903_v7  ;;  %1122 = vperm.xlu1 %2312, %v2959_v5   ;;  %v863_v37 = vpop.permute.xlu1 %862  ;;  %3874 = vst [vmem:[#allocation25_spill] sm:$0xff] %v3085_v52  ;;  %v3157_v7 = vld [vmem:[%s2590_s21 + $0x53] sm:$0xff] }
 0x122   : > { %v914_v18 = vmul.f32 %v2979_v31, %v863_v37 }
 0x123   : > { %v3079_v11 = vadd.f32 %v924_v43, %v2944_v61  ;;  %v3097_v61 = vld [vmem:[%s3835_s6 + $0x4] sm:$0x3] }
 0x124   : > { %v930_v41 = vadd.f32 %v914_v18, %v833_v10  ;;  %v3109_v21 = vperm.slane %v3097_v61, 0  ;;  %v461_v18 = vld [vmem:[%s2801_s24 + $0x38] sm:$0xff] }
 0x125   : > { %1094 = vperm.xlu0 %2327, %v2930_v36  }
 0x126   : > { %v3082_v17 = vpop.permute.xlu0 %1423 }
 0x128   : > { %2314 = vset.pattern.permute.xlu2 %v3866_v15 }
 0x129   : > { %1134 = vperm.xlu1 %2312, %v2972_v51   ;;  %v3089_v5 = vpop.permute.xlu1 %874  ;;  %1190 = vperm.xlu2 %2314, %v3085_v52   ;;  %v3092_v19 = vpop.permute.xlu2 %967  ;;  %v3106_v51 = vld [vmem:[%s2590_s21 + $0x13] sm:$0xff] }
 0x12d   : > { %1106 = vperm.xlu0 %2327, %v2948_v6  }
 0x12e   : > { %v3100_v36 = vpop.permute.xlu0 %1453 }
 0x131   : > { %2315 = vset.pattern.permute.xlu1 %v3866_v15  ;;  %v3112_v46 = vpop.permute.xlu1 %886  ;;  %1205 = vperm.xlu2 %2314, %v3103_v54   ;;  %v983_v2 = vpop.permute.xlu2 %982 }
 0x132   : > { %v1045_v6 = vmul.f32 %v3109_v21, %v983_v2  ;;  %1200 = vperm.xlu1 %2315, %v3106_v51  }
 0x134   : > { %v3117_v33 = vadd.f32 %v1045_v6, %v930_v41  ;;  %v815_v41 = vmul.f32 %v2858_v34, %v2902_v38  ;;  %v912_v6 = vmul.f32 %v2979_v31, %v3060_v57  ;;  %v592_v38 = vmul.f32 %v2803_v16, %v2762_v3 }
 0x135   : > { %1118 = vperm.xlu0 %2327, %v2963_v12   ;;  %v3138_v12 = vld [vmem:[%s2590_s21 + $0x43] sm:$0xff] }
 0x136   : > { %v3120_v47 = vpop.permute.xlu0 %1483 }
 0x139   : > { %v3128_v60 = vpop.permute.xlu1 %898  ;;  %1215 = vperm.xlu2 %2314, %v3123_v35   ;;  %v3131_v25 = vpop.permute.xlu2 %992 }
 0x13a   : > { %1210 = vperm.xlu1 %2315, %v3126_v45  }
 0x13d   : > { %1130 = vperm.xlu0 %2327, %v2976_v20   ;;  %v473_v20 = vadd.f32 %v2812_v24, %v456_v27 }
 0x13e   : > { %v3135_v44 = vpop.permute.xlu0 %1488 }
 0x13f   : > { %3875 = vst [vmem:[#allocation26_spill] sm:$0xff] %v3135_v44  ;;  %v603_v43 = vadd.f32 %v587_v48, %v473_v20  ;;  %v3888_v44 = vld [vmem:[#allocation22_spill] sm:$0xff] }
 0x141   : > { %1230 = vperm.xlu2 %2314, %v3138_v12   ;;  %v3144_v59 = vpop.permute.xlu2 %1007 }
 0x142   : > { %1225 = vperm.xlu1 %2315, %v3141_v8   ;;  %v963_v39 = vpop.permute.xlu1 %962 }
 0x143   : > { %v1041_v1 = vmul.f32 %v3109_v21, %v963_v39  ;;  %v478_v39 = vadd.f32 %v2812_v24, %v461_v18 }
 0x145   : > { %v3152_v4 = vadd.f32 %v1041_v1, %v2993_v26  ;;  %1346 = vperm.xlu0 %2327, %v1181_v22   ;;  %v1043_v1 = vmul.f32 %v3109_v21, %v2950_v63 }
 0x147   : > { %v627_v13 = vpop.permute.xlu0 %626 }
 0x148   : > { %v684_v37 = vmul.f32 %v2845_v28, %v627_v13  ;;  %v1183_v13 = vld [vmem:[%s2590_s21 + $0x6b] sm:$0xff] }
 0x149   : > { %1245 = vperm.xlu2 %2314, %v1181_v22   ;;  %v3160_v10 = vpop.permute.xlu2 %1022 }
 0x14a   : > { %v700_v26 = vadd.f32 %v684_v37, %v603_v43  ;;  %1240 = vperm.xlu1 %2315, %v3157_v7   ;;  %v978_v2 = vpop.permute.xlu1 %977  ;;  %v608_v43 = vadd.f32 %v592_v38, %v478_v39 }
 0x14b   : > { %v1044_v56 = vmul.f32 %v3109_v21, %v978_v2 }
 0x14c   : > { %v831_v27 = vadd.f32 %v815_v41, %v700_v26  ;;  %v3876_v41 = vld [vmem:[#allocation7_spill] sm:$0xff]  ;;  %v917_v26 = vmul.f32 %v2979_v31, %v3089_v5 }
 0x14d   : > { %v3171_v22 = vadd.f32 %v1044_v56, %v3015_v14  ;;  %1558 = vperm.xlu0 %2327, %v2850_v29   ;;  %v820_v29 = vmul.f32 %v2858_v34, %v2935_v53  ;;  %v3878_v53 = vld [vmem:[#allocation21_spill] sm:$0xff] }
 0x14e   : > { %v928_v20 = vadd.f32 %v912_v6, %v831_v27  ;;  %v3877_v6 = vld [vmem:[#allocation11_spill] sm:$0xff]  ;;  %v1048_v39 = vmul.f32 %v3109_v21, %v3878_v53  ;;  %v3882_v53 = vld [vmem:[#allocation6_spill] sm:$0xff] }
 0x14f   : > { %v647_v48 = vpop.permute.xlu0 %646  ;;  %v595_v27 = vmul.f32 %v2803_v16, %v3877_v6  ;;  %v920_v6 = vmul.f32 %v2979_v31, %v3112_v46 }
 0x150   : > { %v689_v57 = vmul.f32 %v2845_v28, %v647_v48  ;;  %v1059_v37 = vadd.f32 %v1043_v1, %v928_v20  ;;  %v1404_v20 = vld [vmem:[%s2590_s21 + $0x34] sm:$0xff]  ;;  %v3198_v48 = vperm.slane %v3097_v61, 1 }
 0x151   : > { %2316 = vset.pattern.permute.xlu2 %v3867_v49  ;;  %v3181_v14 = vpop.permute.xlu2 %1037 }
 0x152   : > { %v705_v18 = vadd.f32 %v689_v57, %v608_v43  ;;  %1255 = vperm.xlu1 %2315, %v1183_v13   ;;  %v988_v3 = vpop.permute.xlu1 %987  ;;  %1326 = vperm.xlu2 %2316, %v3876_v41   ;;  %v3879_v43 = vld [vmem:[#allocation16_spill] sm:$0xff]  ;;  %v3881_v41 = vld [vmem:[#allocation5_spill] sm:$0xff] }
 0x153   : > { %v1046_v63 = vmul.f32 %v3109_v21, %v988_v3  ;;  %v611_v5 = vadd.f32 %v595_v27, %v3879_v43  ;;  %v3883_v43 = vld [vmem:[#allocation10_spill] sm:$0xff] }
 0x154   : > { %v836_v2 = vadd.f32 %v820_v29, %v705_v18 }
 0x155   : > { %v3190_v56 = vadd.f32 %v1046_v63, %v3029_v62  ;;  %1354 = vperm.xlu0 %2327, %v1183_v13   ;;  %v3880_v13 = vld [vmem:[#allocation19_spill] sm:$0xff] }
 0x156   : > { %v933_v38 = vadd.f32 %v917_v26, %v836_v2  ;;  %v823_v29 = vmul.f32 %v2858_v34, %v3880_v13  ;;  %v455_v26 = vld [vmem:[%s2801_s24 + $0x8] sm:$0xff] }
 0x157   : > { %v659_v1 = vpop.permute.xlu0 %658  ;;  %v472_v13 = vadd.f32 %v2812_v24, %v455_v26 }
 0x158   : > { %v692_v57 = vmul.f32 %v2845_v28, %v659_v1  ;;  %v3202_v62 = vadd.f32 %v1048_v39, %v933_v38  ;;  %v586_v39 = vmul.f32 %v2803_v16, %v3882_v53 }
 0x15a   : > { %v708_v18 = vadd.f32 %v692_v57, %v611_v5  ;;  %1448 = vperm.xlu1 %2315, %v1404_v20   ;;  %v1003_v3 = vpop.permute.xlu1 %1002  ;;  %1306 = vperm.xlu2 %2316, %v3881_v41   ;;  %v1083_v63 = vpop.permute.xlu2 %1082  ;;  %v3884_v5 = vld [vmem:[#allocation13_spill] sm:$0xff] }
 0x15b   : > { %v1049_v61 = vmul.f32 %v3109_v21, %v1003_v3  ;;  %v1140_v2 = vmul.f32 %v3198_v48, %v1083_v63  ;;  %v598_v57 = vmul.f32 %v2803_v16, %v3884_v5  ;;  %v3885_v3 = vld [vmem:[#allocation23_spill] sm:$0xff]  ;;  %v1409_v41 = vld [vmem:[%s2590_s21 + $0x5c] sm:$0xff]  ;;  %v826_v5 = vmul.f32 %v2858_v34, %v3888_v44 }
 0x15c   : > { %v839_v27 = vadd.f32 %v823_v29, %v708_v18  ;;  %v1051_v46 = vmul.f32 %v3109_v21, %v3885_v3  ;;  %v3886_v63 = vld [vmem:[#allocation17_spill] sm:$0xff] }
 0x15d   : > { %v3215_v38 = vadd.f32 %v1049_v61, %v3050_v55  ;;  %v3217_v1 = vadd.f32 %v1140_v2, %v1059_v37  ;;  %1338 = vperm.xlu0 %2327, %v3883_v43   ;;  %v614_v53 = vadd.f32 %v598_v57, %v3886_v63  ;;  %v3887_v61 = vld [vmem:[#allocation9_spill] sm:$0xff]  ;;  %v602_v43 = vadd.f32 %v586_v39, %v472_v13  ;;  %v3889_v63 = vld [vmem:[#allocation20_spill] sm:$0xff] }
 0x15e   : > { %v936_v29 = vadd.f32 %v920_v6, %v839_v27  ;;  %v683_v2 = vmul.f32 %v2845_v28, %v3887_v61  ;;  %v460_v6 = vld [vmem:[%s2801_s24 + $0x30] sm:$0xff]  ;;  %v3890_v13 = vld [vmem:[#allocation8_spill] sm:$0xff] }
 0x15f   : > { %v671_v18 = vpop.permute.xlu0 %670  ;;  %v591_v44 = vmul.f32 %v2803_v16, %v3890_v13  ;;  %v3893_v13 = vld [vmem:[#allocation12_spill] sm:$0xff] }
 0x160   : > { %v695_v55 = vmul.f32 %v2845_v28, %v671_v18  ;;  %v1067_v37 = vadd.f32 %v1051_v46, %v936_v29  ;;  %v814_v46 = vmul.f32 %v2858_v34, %v3889_v63  ;;  %v923_v29 = vmul.f32 %v2979_v31, %v3128_v60 }
 0x162   : > { %v711_v26 = vadd.f32 %v695_v55, %v614_v53  ;;  %1473 = vperm.xlu1 %2315, %v1409_v41   ;;  %v1018_v52 = vpop.permute.xlu1 %1017  ;;  %1554 = vperm.xlu2 %2316, %v1404_v20   ;;  %v1091_v3 = vpop.permute.xlu2 %1090  ;;  %v477_v53 = vadd.f32 %v2812_v24, %v460_v6  ;;  %v1054_v55 = vmul.f32 %v3109_v21, %v3001_v58  ;;  %v3892_v6 = vld [vmem:[#allocation24_spill] sm:$0xff] }
 0x163   : > { %v1052_v27 = vmul.f32 %v3109_v21, %v1018_v52  ;;  %v1142_v57 = vmul.f32 %v3198_v48, %v1091_v3  ;;  %v699_v52 = vadd.f32 %v683_v2, %v602_v43  ;;  %v3891_v3 = vld [vmem:[#allocation14_spill] sm:$0xff] }
 0x164   : > { %v842_v39 = vadd.f32 %v826_v5, %v711_v26 }
 0x165   : > { %v3242_v18 = vadd.f32 %v1052_v27, %v3064_v0  ;;  %v3245_v20 = vadd.f32 %v1142_v57, %v3117_v33  ;;  %1342 = vperm.xlu0 %2327, %v3157_v7   ;;  %v830_v5 = vadd.f32 %v814_v46, %v699_v52  ;;  %v688_v0 = vmul.f32 %v2845_v28, %v3891_v3  ;;  %v3894_v52 = vld [vmem:[#allocation15_spill] sm:$0xff] }
 0x166   : > { %v939_v61 = vadd.f32 %v923_v29, %v842_v39  ;;  %v607_v27 = vadd.f32 %v591_v44, %v477_v53  ;;  %v1042_v33 = vmul.f32 %v3109_v21, %v3092_v19  ;;  %v819_v57 = vmul.f32 %v2858_v34, %v3892_v6 }
 0x167   : > { %v851_v60 = vpop.permute.xlu0 %850 }
 0x168   : > { %v911_v26 = vmul.f32 %v2979_v31, %v851_v60  ;;  %v1070_v16 = vadd.f32 %v1054_v55, %v939_v61  ;;  %v704_v46 = vadd.f32 %v688_v0, %v607_v27  ;;  %v1410_v0 = vld [vmem:[%s2590_s21 + $0x64] sm:$0xff] }
 0x16a   : > { %v927_v7 = vadd.f32 %v911_v26, %v830_v5  ;;  %2317 = vset.pattern.permute.xlu1 %v3867_v49  ;;  %v1033_v24 = vpop.permute.xlu1 %1032  ;;  %1330 = vperm.xlu2 %2316, %v3141_v8   ;;  %v1103_v58 = vpop.permute.xlu2 %1102  ;;  %v3272_v8 = vld [vmem:[%s3835_s6 + $0x6] sm:$0x3] }
 0x16b   : > { %v1055_v2 = vmul.f32 %v3109_v21, %v1033_v24  ;;  %v1145_v43 = vmul.f32 %v3198_v48, %v1103_v58  ;;  %1574 = vperm.xlu1 %2317, %v1409_v41   ;;  %v835_v41 = vadd.f32 %v819_v57, %v704_v46  ;;  %v3276_v34 = vperm.slane %v3272_v8, 0 }
 0x16c   : > { %v1058_v28 = vadd.f32 %v1042_v33, %v927_v7  ;;  %v1050_v33 = vmul.f32 %v3109_v21, %v3144_v59 }
 0x16d   : > { %v3263_v63 = vadd.f32 %v1055_v2, %v3079_v11  ;;  %v3266_v19 = vadd.f32 %v1145_v43, %v3202_v62  ;;  %1322 = vperm.xlu0 %2327, %v3123_v35   ;;  %v1047_v11 = vmul.f32 %v3109_v21, %v3131_v25  ;;  %v1270_v5 = vmul.f32 %v3276_v34, %v3020_v40 }
 0x16f   : > { %v871_v29 = vpop.permute.xlu0 %870 }
 0x170   : > { %v916_v39 = vmul.f32 %v2979_v31, %v871_v29 }
 0x172   : > { %v932_v62 = vadd.f32 %v916_v39, %v835_v41  ;;  %1350 = vperm.xlu2 %2316, %v3893_v13   ;;  %v1115_v35 = vpop.permute.xlu2 %1114  ;;  %v1275_v41 = vmul.f32 %v3276_v34, %v3035_v30 }
 0x173   : > { %v1148_v44 = vmul.f32 %v3198_v48, %v1115_v35  ;;  %1534 = vperm.xlu1 %2317, %v3894_v52   ;;  %v1079_v53 = vpop.permute.xlu1 %1078 }
 0x174   : > { %v1139_v55 = vmul.f32 %v3198_v48, %v1079_v53  ;;  %v1063_v61 = vadd.f32 %v1047_v11, %v932_v62 }
 0x175   : > { %v3284_v60 = vadd.f32 %v1148_v44, %v1067_v37  ;;  %2332 = vset.pattern.permute.xlu0 %v3866_v15 }
 0x176   : > { %v1155_v25 = vadd.f32 %v1139_v55, %v1058_v28  ;;  %v1053_v28 = vmul.f32 %v3109_v21, %v3160_v10 }
 0x177   : > { %v883_v26 = vpop.permute.xlu0 %882 }
 0x178   : > { %v919_v3 = vmul.f32 %v2979_v31, %v883_v26  ;;  %v3291_v27 = vadd.f32 %v1270_v5, %v1155_v25 }
 0x17a   : > { %v935_v7 = vadd.f32 %v919_v3, %v3013_v32  ;;  %2318 = vset.pattern.permute.xlu2 %v3866_v15  ;;  %v1127_v37 = vpop.permute.xlu2 %1126  ;;  %v1400_v32 = vld [vmem:[%s2590_s21 + $0x14] sm:$0xff] }
 0x17b   : > { %v1151_v24 = vmul.f32 %v3198_v48, %v1127_v37  ;;  %1310 = vperm.xlu1 %2317, %v3106_v51   ;;  %v1087_v40 = vpop.permute.xlu1 %1086  ;;  %1478 = vperm.xlu2 %2318, %v1410_v0  }
 0x17c   : > { %v1141_v58 = vmul.f32 %v3198_v48, %v1087_v40  ;;  %v1066_v2 = vadd.f32 %v1050_v33, %v935_v7  ;;  %v1281_v33 = vmul.f32 %v3276_v34, %v3072_v9 }
 0x17d   : > { %v3300_v43 = vadd.f32 %v1151_v24, %v1070_v16 }
 0x17e   : > { %v1157_v6 = vadd.f32 %v1141_v58, %v3171_v22 }
 0x17f   : > { %v895_v57 = vpop.permute.xlu0 %894 }
 0x180   : > { %v922_v59 = vmul.f32 %v2979_v31, %v895_v57 }
 0x182   : > { %v938_v46 = vadd.f32 %v922_v59, %v3026_v42  ;;  %v1056_v42 = vmul.f32 %v3109_v21, %v3181_v14 }
 0x183   : > { %2319 = vset.pattern.permute.xlu1 %v3866_v15  ;;  %v1099_v51 = vpop.permute.xlu1 %1098  ;;  %2320 = vset.pattern.permute.xlu2 %v3867_v49  ;;  %v1191_v29 = vpop.permute.xlu2 %1190 }
 0x184   : > { %v1144_v16 = vmul.f32 %v3198_v48, %v1099_v51  ;;  %1428 = vperm.xlu1 %2319, %v1400_v32   ;;  %1578 = vperm.xlu2 %2320, %v1410_v0   ;;  %v1069_v22 = vadd.f32 %v1053_v28, %v938_v46  ;;  %v1269_v14 = vmul.f32 %v3276_v34, %v1191_v29  ;;  %v1406_v0 = vld [vmem:[%s2590_s21 + $0x44] sm:$0xff]  ;;  %v1656_v28 = vld [vmem:[%s3836_s7 + $0x70] sm:$0xff] }
 0x185   : > { %v1655_v46 = vld [vmem:[%s3836_s7 + $0x68] sm:$0xff]  ;;  %v1654_v29 = vld [vmem:[%s3836_s7 + $0x60] sm:$0xff] }
 0x186   : > { %v1160_v39 = vadd.f32 %v1144_v16, %v1063_v61  ;;  %v3370_v16 = vld [vmem:[%s2590_s21 + $0x4] sm:$0xff] }
 0x187   : > { %v907_v11 = vpop.permute.xlu0 %906  ;;  %1418 = vperm.xlu0 %2332, %v3370_v16  }
 0x188   : > { %v925_v10 = vmul.f32 %v2979_v31, %v907_v11  ;;  %v3314_v62 = vadd.f32 %v1275_v41, %v1160_v39  ;;  %v1278_v31 = vmul.f32 %v3276_v34, %v3055_v23  ;;  %v1184_v39 = vld [vmem:[%s2590_s21 + $0x73] sm:$0xff] }
 0x18a   : > { %v941_v13 = vadd.f32 %v925_v10, %v3047_v50  ;;  %v1653_v10 = vld [vmem:[%s3836_s7 + $0x58] sm:$0xff] }
 0x18b   : > { %v1111_v35 = vpop.permute.xlu1 %1110  ;;  %v1206_v44 = vpop.permute.xlu2 %1205 }
 0x18c   : > { %v1147_v52 = vmul.f32 %v3198_v48, %v1111_v35  ;;  %v1272_v53 = vmul.f32 %v3276_v34, %v1206_v44  ;;  %2321 = vset.pattern.permute.xlu1 %v3867_v49  ;;  %1538 = vperm.xlu2 %2320, %v1400_v32   ;;  %v1072_v30 = vadd.f32 %v1056_v42, %v941_v13  ;;  %v3895_v44 = vld [vmem:[#allocation18_spill] sm:$0xff] }
 0x18d   : > { %1334 = vperm.xlu1 %2321, %v3138_v12  }
 0x18e   : > { %v1163_v55 = vadd.f32 %v1147_v52, %v1066_v2  ;;  %v3325_v21 = vadd.f32 %v1272_v53, %v1157_v6  ;;  %v3346_v2 = vld [vmem:[%s2590_s21 + $0x1c] sm:$0xff]  ;;  %v1652_v53 = vld [vmem:[%s3836_s7 + $0x50] sm:$0xff] }
 0x18f   : > { %v1075_v50 = vpop.permute.xlu0 %1074 }
 0x190   : > { %v1138_v61 = vmul.f32 %v3198_v48, %v1075_v50  ;;  %v3329_v5 = vadd.f32 %v1278_v31, %v1163_v55 }
 0x192   : > { %v1154_v25 = vadd.f32 %v1138_v61, %v3152_v4 }
 0x193   : > { %v1123_v26 = vpop.permute.xlu1 %1122  ;;  %v1216_v3 = vpop.permute.xlu2 %1215 }
 0x194   : > { %v1150_v12 = vmul.f32 %v3198_v48, %v1123_v26  ;;  %1314 = vperm.xlu2 %2320, %v3103_v54   ;;  %v3335_v23 = vadd.f32 %v1269_v14, %v1154_v25  ;;  %v1274_v4 = vmul.f32 %v3276_v34, %v1216_v3  ;;  %v1657_v54 = vld [vmem:[%s3836_s7 + $0x78] sm:$0xff]  ;;  %v3413_v26 = vld [vmem:[%s3835_s6 + $0x8] sm:$0x3] }
 0x195   : > { %2322 = vset.pattern.permute.xlu1 %v3866_v15  ;;  %2212 = vmatpush.msra.mxu2 %v1657_v54  ;;  %v1649_v14 = vld [vmem:[%s3836_s7 + $0x38] sm:$0xff] }
 0x196   : > { %v1166_v7 = vadd.f32 %v1150_v12, %v1069_v22  ;;  %1458 = vperm.xlu1 %2322, %v1406_v0   ;;  %2213 = vmatpush.msra.mxu3 %v1657_v54  ;;  %v3423_v12 = vperm.slane %v3272_v8, 1  ;;  %v1646_v8 = vld [vmem:[%s3836_s7 + $0x20] sm:$0xff] }
 0x197   : > { %v1095_v37 = vpop.permute.xlu0 %1094  ;;  %2211 = vmatpush.msra.mxu1 %v1657_v54  ;;  %1674 = vmatpush.msrb.mxu0 %v1657_v54 }
 0x198   : > { %v1143_v24 = vmul.f32 %v3198_v48, %v1095_v37  ;;  %v3342_v40 = vadd.f32 %v1281_v33, %v1166_v7  ;;  %2215 = vmatpush.msra.mxu2 %v1656_v28  ;;  %2216 = vmatpush.msra.mxu3 %v1656_v28  ;;  %v1648_v33 = vld [vmem:[%s3836_s7 + $0x30] sm:$0xff]  ;;  %v1647_v7 = vld [vmem:[%s3836_s7 + $0x28] sm:$0xff] }
 0x199   : > { %2214 = vmatpush.msra.mxu1 %v1656_v28  ;;  %1675 = vmatpush.msrb.mxu0 %v1656_v28 }
 0x19a   : > { %v1159_v58 = vadd.f32 %v1143_v24, %v3190_v56  ;;  %2218 = vmatpush.msra.mxu2 %v1655_v46  ;;  %2219 = vmatpush.msra.mxu3 %v1655_v46  ;;  %v1407_v24 = vld [vmem:[%s2590_s21 + $0x4c] sm:$0xff] }
 0x19b   : > { %v1135_v6 = vpop.permute.xlu1 %1134  ;;  %v1231_v57 = vpop.permute.xlu2 %1230  ;;  %2217 = vmatpush.msra.mxu1 %v1655_v46  ;;  %1676 = vmatpush.msrb.mxu0 %v1655_v46  ;;  %v1642_v46 = vld [vmem:[%s3836_s7] sm:$0xff] }
 0x19c   : > { %v1153_v9 = vmul.f32 %v3198_v48, %v1135_v6  ;;  %2324 = vset.pattern.permute.xlu2 %v3866_v15  ;;  %v3353_v59 = vadd.f32 %v1274_v4, %v1159_v58  ;;  %v1277_v22 = vmul.f32 %v3276_v34, %v1231_v57  ;;  %2221 = vmatpush.msra.mxu2 %v1654_v29  ;;  %v1645_v6 = vld [vmem:[%s3836_s7 + $0x18] sm:$0xff] }
 0x19d   : > { %1433 = vperm.xlu2 %2324, %v3346_v2   ;;  %2222 = vmatpush.msra.mxu3 %v1654_v29 }
 0x19e   : > { %v3356_v56 = vadd.f32 %v1153_v9, %v1072_v30  ;;  %2323 = vset.pattern.permute.xlu1 %v3867_v49  ;;  %2224 = vmatpush.msra.mxu2 %v1653_v10  ;;  %v1651_v30 = vld [vmem:[%s3836_s7 + $0x48] sm:$0xff] }
 0x19f   : > { %1562 = vperm.xlu1 %2323, %v1406_v0   ;;  %v1107_v32 = vpop.permute.xlu0 %1106  ;;  %2220 = vmatpush.msra.mxu1 %v1654_v29 }
 0x1a0   : > { %v1146_v51 = vmul.f32 %v3198_v48, %v1107_v32  ;;  %2225 = vmatpush.msra.mxu3 %v1653_v10  ;;  %2227 = vmatpush.msra.mxu2 %v1652_v53  ;;  %v1402_v32 = vld [vmem:[%s2590_s21 + $0x24] sm:$0xff] }
 0x1a1   : > { %2223 = vmatpush.msra.mxu1 %v1653_v10  ;;  %1677 = vmatpush.msrb.mxu0 %v1654_v29 }
 0x1a2   : > { %v1162_v41 = vadd.f32 %v1146_v51, %v3215_v38  ;;  %2228 = vmatpush.msra.mxu3 %v1652_v53  ;;  %2230 = vmatpush.msra.mxu2 %v1651_v30 }
 0x1a3   : > { %v3376_v11 = vpop.permute.xlu2 %1245  ;;  %2226 = vmatpush.msra.mxu1 %v1652_v53  ;;  %1678 = vmatpush.msrb.mxu0 %v1653_v10  ;;  %v1185_v10 = vld [vmem:[%s2590_s21 + $0x7b] sm:$0xff] }
 0x1a4   : > { %v1201_v42 = vpop.permute.xlu1 %1200  ;;  %v3381_v13 = vadd.f32 %v1277_v22, %v1162_v41  ;;  %2231 = vmatpush.msra.mxu3 %v1651_v30 }
 0x1a5   : > { %v1271_v35 = vmul.f32 %v3276_v34, %v1201_v42  ;;  %1260 = vperm.xlu2 %2324, %v1184_v39   ;;  %2229 = vmatpush.msra.mxu1 %v1651_v30 }
 0x1a6   : > { %1679 = vmatpush.msrb.mxu0 %v1652_v53 }
 0x1a7   : > { %v3385_v38 = vadd.f32 %v1271_v35, %v3217_v1  ;;  %1582 = vperm.xlu1 %2323, %v3895_v44   ;;  %v3388_v52 = vpop.permute.xlu0 %1118  ;;  %v1650_v1 = vld [vmem:[%s3836_s7 + $0x40] sm:$0xff] }
 0x1a8   : > { %2233 = vmatpush.msra.mxu2 %v1650_v1  ;;  %2234 = vmatpush.msra.mxu3 %v1650_v1 }
 0x1a9   : > { %2232 = vmatpush.msra.mxu1 %v1650_v1  ;;  %1680 = vmatpush.msrb.mxu0 %v1651_v30 }
 0x1aa   : > { %2236 = vmatpush.msra.mxu2 %v1649_v14  ;;  %2237 = vmatpush.msra.mxu3 %v1649_v14 }
 0x1ab   : > { %2235 = vmatpush.msra.mxu1 %v1649_v14  ;;  %1681 = vmatpush.msrb.mxu0 %v1650_v1 }
 0x1ac   : > { %v1211_v31 = vpop.permute.xlu1 %1210  ;;  %v3399_v55 = vpop.permute.xlu2 %1326  ;;  %2239 = vmatpush.msra.mxu2 %v1648_v33  ;;  %2240 = vmatpush.msra.mxu3 %v1648_v33 }
 0x1ad   : > { %v1273_v50 = vmul.f32 %v3276_v34, %v1211_v31  ;;  %2325 = vset.pattern.permute.xlu2 %v3867_v49  ;;  %2238 = vmatpush.msra.mxu1 %v1648_v33 }
 0x1ae   : > { %1358 = vperm.xlu2 %2325, %v1184_v39   ;;  %2242 = vmatpush.msra.mxu2 %v1647_v7 }
 0x1af   : > { %v3407_v61 = vadd.f32 %v1273_v50, %v3245_v20  ;;  %1542 = vperm.xlu1 %2323, %v3346_v2   ;;  %v1131_v25 = vpop.permute.xlu0 %1130  ;;  %v3420_v20 = vperm.slane %v3413_v26, 0  ;;  %2243 = vmatpush.msra.mxu3 %v1647_v7 }
 0x1b0   : > { %v1152_v3 = vmul.f32 %v3198_v48, %v1131_v25  ;;  %2245 = vmatpush.msra.mxu2 %v1646_v8  ;;  %2241 = vmatpush.msra.mxu1 %v1647_v7 }
 0x1b1   : > { %v1498_v58 = vmul.f32 %v3420_v20, %v3082_v17  ;;  %2246 = vmatpush.msra.mxu3 %v1646_v8  ;;  %1682 = vmatpush.msrb.mxu0 %v1649_v14  ;;  %v1504_v44 = vmul.f32 %v3420_v20, %v3100_v36  ;;  %v2402_v14 = vld [vmem:[%s2590_s21 + $0x74] sm:$0xff]  ;;  %v1510_v25 = vmul.f32 %v3420_v20, %v3120_v47 }
 0x1b2   : > { %v3417_v0 = vadd.f32 %v1152_v3, %v3263_v63  ;;  %2248 = vmatpush.msra.mxu2 %v1645_v6  ;;  %2244 = vmatpush.msra.mxu1 %v1646_v8 }
 0x1b3   : > { %2249 = vmatpush.msra.mxu3 %v1645_v6  ;;  %1683 = vmatpush.msrb.mxu0 %v1648_v33 }
 0x1b4   : > { %v1226_v37 = vpop.permute.xlu1 %1225  ;;  %v1307_v4 = vpop.permute.xlu2 %1306  ;;  %2247 = vmatpush.msra.mxu1 %v1645_v6 }
 0x1b5   : > { %v1367_v63 = vmul.f32 %v3423_v12, %v1307_v4  ;;  %v1276_v22 = vmul.f32 %v3276_v34, %v1226_v37  ;;  %1684 = vmatpush.msrb.mxu0 %v1647_v7  ;;  %v3482_v37 = vperm.slane %v3413_v26, 1 }
 0x1b6   : > { %1318 = vperm.xlu2 %2325, %v3126_v45   ;;  %v1644_v45 = vld [vmem:[%s3836_s7 + $0x10] sm:$0xff] }
 0x1b7   : > { %v1383_v2 = vadd.f32 %v1367_v63, %v3291_v27  ;;  %2326 = vset.pattern.permute.xlu1 %v3866_v15  ;;  %v3441_v54 = vpop.permute.xlu0 %1346  ;;  %v1643_v27 = vld [vmem:[%s3836_s7 + $0x8] sm:$0xff]  ;;  %2251 = vmatpush.msra.mxu2 %v1644_v45 }
 0x1b8   : > { %1463 = vperm.xlu1 %2326, %v1407_v24   ;;  %2252 = vmatpush.msra.mxu3 %v1644_v45 }
 0x1b9   : > { %v3449_v17 = vadd.f32 %v1498_v58, %v1383_v2  ;;  %2254 = vmatpush.msra.mxu2 %v1643_v27  ;;  %2250 = vmatpush.msra.mxu1 %v1644_v45 }
 0x1ba   : > { %2255 = vmatpush.msra.mxu3 %v1643_v27  ;;  %1685 = vmatpush.msrb.mxu0 %v1646_v8 }
 0x1bb   : > { %2257 = vmatpush.msra.mxu2 %v1642_v46  ;;  %2253 = vmatpush.msra.mxu1 %v1643_v27 }
 0x1bc   : > { %v1241_v57 = vpop.permute.xlu1 %1240  ;;  %v1555_v9 = vpop.permute.xlu2 %1554  ;;  %2258 = vmatpush.msra.mxu3 %v1642_v46  ;;  %1686 = vmatpush.msrb.mxu0 %v1645_v6  ;;  %v1408_v6 = vld [vmem:[%s2590_s21 + $0x54] sm:$0xff] }
 0x1bd   : > { %v1279_v28 = vmul.f32 %v3276_v34, %v1241_v57  ;;  %2256 = vmatpush.msra.mxu1 %v1642_v46  ;;  %v1600_v4 = vmul.f32 %v3482_v37, %v1555_v9  ;;  %v3896_v57 = vld [vmem:[#allocation25_spill] sm:$0xff] }
 0x1be   : > { %2329 = vset.pattern.permute.xlu2 %v3866_v15  ;;  %1687 = vmatpush.msrb.mxu0 %v1644_v45  ;;  %v1280_v45 = vmul.f32 %v3276_v34, %v3376_v11 }
 0x1bf   : > { %v3461_v51 = vadd.f32 %v1279_v28, %v3284_v60  ;;  %v1559_v29 = vpop.permute.xlu0 %1558  ;;  %1438 = vperm.xlu2 %2329, %v1402_v32   ;;  %v1292_v60 = vadd.f32 %v1276_v22, %v3266_v19  ;;  %v1372_v19 = vmul.f32 %v3423_v12, %v3399_v55  ;;  %v1413_v22 = vld [vmem:[%s2590_s21 + $0x7c] sm:$0xff] }
 0x1c0   : > { %2328 = vset.pattern.permute.xlu1 %v3867_v49  ;;  %1688 = vmatpush.msrb.mxu0 %v1643_v27  ;;  %v1377_v27 = vmul.f32 %v3423_v12, %v3441_v54 }
 0x1c1   : > { %1566 = vperm.xlu1 %2328, %v1407_v24   ;;  %v1388_v7 = vadd.f32 %v1372_v19, %v3314_v62  ;;  %v1149_v24 = vmul.f32 %v3198_v48, %v3388_v52  ;;  %v1601_v62 = vmul.f32 %v3482_v37, %v1559_v29 }
 0x1c2   : > { %1689 = vmatpush.msrb.mxu0 %v1642_v46 }
 0x1c3   : > { %v1165_v26 = vadd.f32 %v1149_v24, %v3242_v18 }
 0x1c4   : > { %v1256_v41 = vpop.permute.xlu1 %1255  ;;  %v1331_v39 = vpop.permute.xlu2 %1330 }
 0x1c5   : > { %v1282_v42 = vmul.f32 %v3276_v34, %v1256_v41  ;;  %v1373_v35 = vmul.f32 %v3423_v12, %v1331_v39  ;;  %v1296_v48 = vadd.f32 %v1280_v45, %v1165_v26  ;;  %v3897_v26 = vld [vmem:[#allocation26_spill] sm:$0xff] }
 0x1c7   : > { %v1298_v53 = vadd.f32 %v1282_v42, %v3300_v43  ;;  %v1389_v30 = vadd.f32 %v1373_v35, %v1292_v60  ;;  %v1355_v1 = vpop.permute.xlu0 %1354  ;;  %1265 = vperm.xlu2 %2329, %v1185_v10   ;;  %v1393_v18 = vadd.f32 %v1377_v27, %v1296_v48 }
 0x1c8   : > { %v1379_v31 = vmul.f32 %v3423_v12, %v1355_v1  ;;  %v1403_v1 = vld [vmem:[%s2590_s21 + $0x2c] sm:$0xff]  ;;  %s2056_s21 = scalar_lea.hbm %s3837_s8, %s2540_s13  ;;  %s2423_s13 = scalar_lea.hbm %s3837_s8, 2 }
 0x1c9   : > { %v1520_v50 = vadd.f32 %v1504_v44, %v1389_v30  ;;  %1586 = vperm.xlu1 %2328, %v2402_v14   ;;  %s2060_s26 = sshll.u32 %s2056_s21, 4  ;;  %s2061_s26 = int_to_ptr.hbm [resolvable:$true] %s2060_s26 }
 0x1ca   : > { %v1395_v3 = vadd.f32 %v1379_v31, %v1298_v53 }
 0x1cb   : > { %v1617_v2 = vadd.f32 %v1601_v62, %v1520_v50 }
 0x1cc   : > { %v1449_v36 = vpop.permute.xlu1 %1448  ;;  %v1351_v33 = vpop.permute.xlu2 %1350  ;;  %v3478_v43 = vadd.f32 %v1510_v25, %v1395_v3 }
 0x1cd   : > { %v1503_v55 = vmul.f32 %v3420_v20, %v1449_v36 }
 0x1cf   : > { %v1519_v63 = vadd.f32 %v1503_v55, %v1388_v7  ;;  %2330 = vset.pattern.permute.xlu2 %v3867_v49 }
 0x1d0   : > { %1362 = vperm.xlu2 %2330, %v1185_v10  }
 0x1d1   : > { %v1616_v47 = vadd.f32 %v1600_v4, %v1519_v63  ;;  %1546 = vperm.xlu1 %2328, %v1402_v32   ;;  %v1378_v32 = vmul.f32 %v3423_v12, %v1351_v33 }
 0x1d3   : > { %2336 = vtanh.f32 %v1616_v47  ;;  %v1394_v10 = vadd.f32 %v1378_v32, %v3342_v40 }
 0x1d4   : > { %v1474_v8 = vpop.permute.xlu1 %1473  ;;  %2338 = vtanh.f32 %v1617_v2  ;;  %v1511_v2 = vmul.f32 %v3420_v20, %v3897_v26 }
 0x1d5   : > { %v1479_v58 = vpop.permute.xlu2 %1478  ;;  %v1508_v52 = vmul.f32 %v3420_v20, %v1474_v8 }
 0x1d6   : > { %v1509_v29 = vmul.f32 %v3420_v20, %v1479_v58 }
 0x1d7   : > { %v1524_v11 = vadd.f32 %v1508_v52, %v1393_v18 }
 0x1d8   : > { %1302 = vperm.xlu2 %2330, %v3896_v57   ;;  %v1525_v42 = vadd.f32 %v1509_v29, %v1394_v10 }
 0x1d9   : > { %v2337_v9 = vpop.eup %2336  ;;  %2331 = vset.pattern.permute.xlu1 %v3866_v15 }
 0x1da   : > { %1468 = vperm.xlu1 %2331, %v1408_v6   ;;  %1708 = vmatmul.f32.vlgmr.msra.gmra.mxu2 %v2337_v9  ;;  %v2339_v39 = vpop.eup %2338 }
 0x1dd   : > { %v1575_v28 = vpop.permute.xlu1 %1574 }
 0x1de   : > { %v1605_v46 = vmul.f32 %v3482_v37, %v1575_v28  ;;  %v1579_v54 = vpop.permute.xlu2 %1578 }
 0x1df   : > { %v1606_v60 = vmul.f32 %v3482_v37, %v1579_v54 }
 0x1e0   : > { %v1621_v41 = vadd.f32 %v1605_v46, %v1524_v11  ;;  %1570 = vperm.xlu2 %2330, %v1408_v6  }
 0x1e1   : > { %v1622_v35 = vadd.f32 %v1606_v60, %v1525_v42 }
 0x1e2   : > { %2340 = vtanh.f32 %v1621_v41  ;;  %1493 = vperm.xlu1 %2331, %v1413_v22   ;;  %1711 = vmatmul.f32.gmra.mxu2 %v2339_v39 }
 0x1e3   : > { %2342 = vtanh.f32 %v1622_v35 }
 0x1e5   : > { %v1535_v44 = vpop.permute.xlu1 %1534 }
 0x1e6   : > { %v1595_v53 = vmul.f32 %v3482_v37, %v1535_v44  ;;  %v1539_v30 = vpop.permute.xlu2 %1538 }
 0x1e8   : > { %v2341_v31 = vpop.eup %2340  ;;  %v1611_v19 = vadd.f32 %v1595_v53, %v3449_v17  ;;  %1590 = vperm.xlu2 %2330, %v1413_v22   ;;  %v1596_v17 = vmul.f32 %v3482_v37, %v1539_v30  ;;  %v1339_v53 = vpop.permute.xlu0 %1338 }
 0x1e9   : > { %1723 = vmatmul.f32.vlgmr.msra.gmra.mxu3 %v2341_v31  ;;  %v2343_v14 = vpop.eup %2342 }
 0x1ea   : > { %2344 = vtanh.f32 %v1611_v19  ;;  %1443 = vperm.xlu1 %2331, %v1403_v1  }
 0x1ed   : > { %v1311_v40 = vpop.permute.xlu1 %1310 }
 0x1ee   : > { %v1315_v50 = vpop.permute.xlu2 %1314  ;;  %v1368_v3 = vmul.f32 %v3423_v12, %v1311_v40 }
 0x1ef   : > { %v1369_v46 = vmul.f32 %v3423_v12, %v1315_v50 }
 0x1f0   : > { %v2345_v25 = vpop.eup %2344  ;;  %1550 = vperm.xlu2 %2330, %v1403_v1   ;;  %v1384_v33 = vadd.f32 %v1368_v3, %v3385_v38 }
 0x1f1   : > { %1693 = vmatmul.f32.vlgmr.msra.gmra.mxu1 %v2345_v25  ;;  %1726 = vmatmul.f32.gmra.mxu3 %v2343_v14 }
 0x1f2   : > { %2333 = vset.pattern.permute.xlu1 %v3867_v49 }
 0x1f3   : > { %1530 = vperm.xlu1 %2333, %v3370_v16  }
 0x1f6   : > { %v1429_v36 = vpop.permute.xlu1 %1428 }
 0x1f7   : > { %v1499_v7 = vmul.f32 %v3420_v20, %v1429_v36  ;;  %v1434_v55 = vpop.permute.xlu2 %1433 }
 0x1f8   : > { %2335 = vset.pattern.permute.xlu2 %v3866_v15  ;;  %v1500_v29 = vmul.f32 %v3420_v20, %v1434_v55 }
 0x1f9   : > { %v1515_v4 = vadd.f32 %v1499_v7, %v1384_v33 }
 0x1fb   : > { %v1612_v63 = vadd.f32 %v1596_v17, %v1515_v4  ;;  %2334 = vset.pattern.permute.xlu1 %v3866_v15 }
 0x1fd   : > { %2346 = vtanh.f32 %v1612_v63 }
 0x1ff   : > { %v1335_v49 = vpop.permute.xlu1 %1334  ;;  %v1261_v47 = vpop.permute.xlu2 %1260 }
 0x200   : > { %v1283_v16 = vmul.f32 %v3276_v34, %v1261_v47  ;;  %v1374_v45 = vmul.f32 %v3423_v12, %v1335_v49 }
 0x202   : > { %v1299_v38 = vadd.f32 %v1283_v16, %v3417_v0  ;;  %v1390_v57 = vadd.f32 %v1374_v45, %v3381_v13  ;;  %v1385_v13 = vadd.f32 %v1369_v46, %v3325_v21 }
 0x203   : > { %v2347_v24 = vpop.eup %2346 }
 0x204   : > { %1696 = vmatmul.f32.gmra.mxu1 %v2347_v24  ;;  %v1516_v39 = vadd.f32 %v1500_v29, %v1385_v13  ;;  %v1343_v24 = vpop.permute.xlu0 %1342 }
 0x208   : > { %v1459_v8 = vpop.permute.xlu1 %1458  ;;  %v1359_v62 = vpop.permute.xlu2 %1358 }
 0x209   : > { %v1380_v58 = vmul.f32 %v3423_v12, %v1359_v62  ;;  %v1505_v27 = vmul.f32 %v3420_v20, %v1459_v8  ;;  %v1376_v62 = vmul.f32 %v3423_v12, %v1343_v24  ;;  %v1668_v24 = vld [vmem:[%s3561_s25 + $0x50] sm:$0xff] }
 0x20b   : > { %v1396_v6 = vadd.f32 %v1380_v58, %v1299_v38  ;;  %v1521_v48 = vadd.f32 %v1505_v27, %v1390_v57  ;;  %v1392_v58 = vadd.f32 %v1376_v62, %v3461_v51 }
 0x20d   : > { %v1527_v15 = vadd.f32 %v1511_v2, %v1396_v6 }
 0x210   : > { %v1319_v32 = vpop.permute.xlu2 %1318 }
 0x211   : > { %v1563_v9 = vpop.permute.xlu1 %1562  ;;  %v1370_v17 = vmul.f32 %v3423_v12, %v1319_v32 }
 0x212   : > { %v1602_v52 = vmul.f32 %v3482_v37, %v1563_v9 }
 0x214   : > { %v1618_v18 = vadd.f32 %v1602_v52, %v1521_v48 }
 0x216   : > { %2348 = vtanh.f32 %v1618_v18  ;;  %v1323_v18 = vpop.permute.xlu0 %1322 }
 0x219   : > { %v1583_v0 = vpop.permute.xlu1 %1582  ;;  %v1439_v22 = vpop.permute.xlu2 %1438 }
 0x21a   : > { %v1607_v28 = vmul.f32 %v3482_v37, %v1583_v0  ;;  %v1501_v55 = vmul.f32 %v3420_v20, %v1439_v22 }
 0x21c   : > { %v2349_v11 = vpop.eup %2348  ;;  %v1623_v54 = vadd.f32 %v1607_v28, %v3478_v43  ;;  %v1375_v43 = vmul.f32 %v3423_v12, %v1339_v53  ;;  %v1371_v28 = vmul.f32 %v3423_v12, %v1323_v18 }
 0x21d   : > { %1714 = vmatmul.f32.gmra.mxu2 %v2349_v11 }
 0x21e   : > { %2350 = vtanh.f32 %v1623_v54  ;;  %v1391_v21 = vadd.f32 %v1375_v43, %v3329_v5  ;;  %v1386_v5 = vadd.f32 %v1370_v17, %v3407_v61  ;;  %v1387_v29 = vadd.f32 %v1371_v28, %v3353_v59  ;;  %v1419_v22 = vpop.permute.xlu0 %1418  ;;  %v1665_v17 = vld [vmem:[%s3561_s25 + $0x38] sm:$0xff] }
 0x220   : > { %v1517_v63 = vadd.f32 %v1501_v55, %v1386_v5  ;;  %v1660_v55 = vld [vmem:[%s3561_s25 + $0x10] sm:$0xff] }
 0x221   : > { %v1543_v41 = vpop.permute.xlu1 %1542  ;;  %v1266_v35 = vpop.permute.xlu2 %1265  ;;  %v1664_v5 = vld [vmem:[%s3561_s25 + $0x30] sm:$0xff] }
 0x222   : > { %v1597_v10 = vmul.f32 %v3482_v37, %v1543_v41  ;;  %v1284_v61 = vmul.f32 %v3276_v34, %v1266_v35  ;;  %v1497_v35 = vmul.f32 %v3420_v20, %v1419_v22 }
 0x224   : > { %v2351_v60 = vpop.eup %2350  ;;  %v1613_v42 = vadd.f32 %v1597_v10, %v1516_v39  ;;  %v1300_v9 = vadd.f32 %v1284_v61, %v3356_v56  ;;  %v1673_v61 = vld [vmem:[%s3561_s25 + $0x78] sm:$0xff] }
 0x225   : > { %1729 = vmatmul.f32.gmra.mxu3 %v2351_v60 }
 0x226   : > { %2352 = vtanh.f32 %v1613_v42 }
 0x22a   : > { %v1464_v44 = vpop.permute.xlu1 %1463  ;;  %v1363_v40 = vpop.permute.xlu2 %1362 }
 0x22b   : > { %v1506_v1 = vmul.f32 %v3420_v20, %v1464_v44 }
 0x22c   : > { %v2353_v30 = vpop.eup %2352 }
 0x22d   : > { %1699 = vmatmul.f32.gmra.mxu1 %v2353_v30  ;;  %v1522_v19 = vadd.f32 %v1506_v1, %v1391_v21 }
 0x232   : > { %v1303_v33 = vpop.permute.xlu2 %1302 }
 0x233   : > { %v1567_v31 = vpop.permute.xlu1 %1566  ;;  %v1366_v13 = vmul.f32 %v3423_v12, %v1303_v33  ;;  %v1663_v33 = vld [vmem:[%s3561_s25 + $0x28] sm:$0xff] }
 0x234   : > { %v1603_v50 = vmul.f32 %v3482_v37, %v1567_v31 }
 0x235   : > { %v1382_v42 = vadd.f32 %v1366_v13, %v3335_v23 }
 0x236   : > { %v1619_v14 = vadd.f32 %v1603_v50, %v1522_v19 }
 0x237   : > { %v1513_v53 = vadd.f32 %v1497_v35, %v1382_v42 }
 0x238   : > { %2354 = vtanh.f32 %v1619_v14 }
 0x23a   : > { %v1571_v8 = vpop.permute.xlu2 %1570 }
 0x23b   : > { %v1587_v25 = vpop.permute.xlu1 %1586  ;;  %v1604_v6 = vmul.f32 %v3482_v37, %v1571_v8 }
 0x23c   : > { %v1608_v3 = vmul.f32 %v3482_v37, %v1587_v25 }
 0x23e   : > { %v2355_v36 = vpop.eup %2354  ;;  %v1624_v7 = vadd.f32 %v1608_v3, %v1527_v15  ;;  %v1381_v15 = vmul.f32 %v3423_v12, %v1363_v40 }
 0x23f   : > { %1717 = vmatmul.f32.gmra.mxu2 %v2355_v36 }
 0x240   : > { %2356 = vtanh.f32 %v1624_v7  ;;  %v1397_v52 = vadd.f32 %v1381_v15, %v1300_v9  ;;  %v1659_v7 = vld [vmem:[%s3561_s25 + $0x8] sm:$0xff] }
 0x242   : > { %v1591_v57 = vpop.permute.xlu2 %1590 }
 0x243   : > { %v1547_v4 = vpop.permute.xlu1 %1546  ;;  %v1609_v32 = vmul.f32 %v3482_v37, %v1591_v57 }
 0x244   : > { %v1598_v49 = vmul.f32 %v3482_v37, %v1547_v4 }
 0x246   : > { %v2357_v47 = vpop.eup %2356  ;;  %v1614_v16 = vadd.f32 %v1598_v49, %v1517_v63 }
 0x247   : > { %1732 = vmatmul.f32.gmra.mxu3 %v2357_v47  ;;  %v1669_v47 = vld [vmem:[%s3561_s25 + $0x58] sm:$0xff] }
 0x248   : > { %2358 = vtanh.f32 %v1614_v16 }
 0x24a   : > { %v1551_v46 = vpop.permute.xlu2 %1550 }
 0x24b   : > { %v1599_v41 = vmul.f32 %v3482_v37, %v1551_v46 }
 0x24c   : > { %v1469_v38 = vpop.permute.xlu1 %1468 }
 0x24d   : > { %v1507_v26 = vmul.f32 %v3420_v20, %v1469_v38 }
 0x24e   : > { %v2359_v2 = vpop.eup %2358 }
 0x24f   : > { %v1523_v45 = vadd.f32 %v1507_v26, %v1392_v58  ;;  %1702 = vmatmul.f32.gmra.mxu1 %v2359_v2  ;;  %v1667_v58 = vld [vmem:[%s3561_s25 + $0x48] sm:$0xff]  ;;  %v1662_v2 = vld [vmem:[%s3561_s25 + $0x20] sm:$0xff] }
 0x251   : > { %v1620_v27 = vadd.f32 %v1604_v6, %v1523_v45 }
 0x253   : > { %2360 = vtanh.f32 %v1620_v27 }
 0x254   : > { %v1494_v48 = vpop.permute.xlu1 %1493 }
 0x255   : > { %v1512_v51 = vmul.f32 %v3420_v20, %v1494_v48  ;;  %v1666_v48 = vld [vmem:[%s3561_s25 + $0x40] sm:$0xff] }
 0x257   : > { %v1528_v0 = vadd.f32 %v1512_v51, %v1397_v52  ;;  %v1658_v51 = vld [vmem:[%s3561_s25] sm:$0xff] }
 0x259   : > { %v2361_v34 = vpop.eup %2360  ;;  %v1625_v11 = vadd.f32 %v1609_v32, %v1528_v0  ;;  %v1670_v32 = vld [vmem:[%s3561_s25 + $0x60] sm:$0xff] }
 0x25a   : > { %1720 = vmatmul.f32.gmra.mxu2 %v2361_v34  ;;  %v1671_v34 = vld [vmem:[%s3561_s25 + $0x68] sm:$0xff] }
 0x25b   : > { %2362 = vtanh.f32 %v1625_v11 }
 0x25c   : > { %v1444_v54 = vpop.permute.xlu1 %1443 }
 0x25d   : > { %v1502_v56 = vmul.f32 %v3420_v20, %v1444_v54  ;;  %v1709_v1 = vpop.f32.mrf.mxu2 }
 0x25e   : > { %v3582_v26 = vadd.f32 %v1709_v1, %v1664_v5 }
 0x25f   : > { %v1518_v39 = vadd.f32 %v1502_v56, %v1387_v29  ;;  %v1672_v29 = vld [vmem:[%s3561_s25 + $0x70] sm:$0xff] }
 0x260   : > { %v1748_v46 = vsel %vm1739_vm0, %v3582_v26, -inf }
 0x261   : > { %v2363_v10 = vpop.eup %2362  ;;  %v1615_v60 = vadd.f32 %v1599_v41, %v1518_v39 }
 0x262   : > { %1735 = vmatmul.f32.gmra.mxu3 %v2363_v10 }
 0x263   : > { %2364 = vtanh.f32 %v1615_v60 }
 0x265   : > { %v1531_v44 = vpop.permute.xlu1 %1530  ;;  %v1712_v23 = vpop.f32.mrf.mxu2 }
 0x266   : > { %v1594_v59 = vmul.f32 %v3482_v37, %v1531_v44  ;;  %v1661_v37 = vld [vmem:[%s3561_s25 + $0x18] sm:$0xff]  ;;  %v3571_v49 = vadd.f32 %v1712_v23, %v1665_v17  ;;  %s2058_s25 = sshll.u32 %s381_s27, 4  ;;  %s2059_s25 = int_to_ptr.vmem [resolvable:$true] %s2058_s25 }
 0x268   : > { %v1610_v30 = vadd.f32 %v1594_v59, %v1513_v53  ;;  %v1750_v9 = vsel %vm1739_vm0, %v3571_v49, -inf }
 0x269   : > { %v2365_v43 = vpop.eup %2364 }
 0x26a   : > { %2366 = vtanh.f32 %v1610_v30  ;;  %1705 = vmatmul.f32.gmra.mxu1 %v2365_v43 }
 0x26c   : > { %v1724_v31 = vpop.f32.mrf.mxu3 }
 0x26d   : > { %v3586_v45 = vadd.f32 %v1724_v31, %v1669_v47 }
 0x26e   : > { %v1694_v21 = vpop.f32.mrf.mxu1 }
 0x26f   : > { %v3577_v62 = vadd.f32 %v1694_v21, %v1659_v7  ;;  %v1758_v22 = vsel %vm1739_vm0, %v3586_v45, -inf }
 0x270   : > { %v2367_v12 = vpop.eup %2366 }
 0x271   : > { %1690 = vmatmul.f32.vlgmr.msrb.gmra.mxu0 %v2367_v12  ;;  %v1741_v18 = vsel %vm1739_vm0, %v3577_v62, -inf }
 0x274   : > { %v1727_v40 = vpop.f32.mrf.mxu3 }
 0x275   : > { %v3617_v60 = vadd.f32 %v1727_v40, %v1670_v32 }
 0x281   : > { %v1697_v19 = vpop.f32.mrf.mxu1 }
 0x282   : > { %v3579_v38 = vadd.f32 %v1697_v19, %v1660_v55 }
 0x284   : > { %v1742_v0 = vsel %vm1739_vm0, %v3579_v38, -inf }
 0x285   : > { %v1749_v42 = vmax.f32 %v1742_v0, %v1748_v46 }
 0x2a0   : > { %v1715_v50 = vpop.f32.mrf.mxu2 }
 0x2a1   : > { %v3613_v41 = vadd.f32 %v1715_v50, %v1666_v48 }
 0x2a3   : > { %v1752_v19 = vsel %vm1739_vm0, %v3613_v41, -inf }
 0x2a8   : > { %v1730_v14 = vpop.f32.mrf.mxu3 }
 0x2a9   : > { %v3619_v35 = vadd.f32 %v1730_v14, %v1671_v34 }
 0x2aa   : > { %v1700_v20 = vpop.f32.mrf.mxu1 }
 0x2ab   : > { %v3569_v4 = vadd.f32 %v1700_v20, %v1661_v37  ;;  %v1760_v20 = vsel %vm1739_vm0, %v3617_v60, -inf  ;;  %v1762_v50 = vsel %vm1739_vm0, %v3619_v35, -inf }
 0x2ad   : > { %v1743_v15 = vsel %vm1739_vm0, %v3569_v4, -inf }
 0x2ae   : > { %v1751_v54 = vmax.f32 %v1743_v15, %v1750_v9 }
 0x2b0   : > { %v1759_v1 = vmax.f32 %v1751_v54, %v1758_v22 }
 0x2c2   : > { %v1718_v3 = vpop.f32.mrf.mxu2 }
 0x2c3   : > { %v3597_v52 = vadd.f32 %v1718_v3, %v1667_v58 }
 0x2c5   : > { %v1754_v44 = vsel %vm1739_vm0, %v3597_v52, -inf }
 0x2ca   : > { %v1733_v36 = vpop.f32.mrf.mxu3 }
 0x2cb   : > { %v3623_v53 = vadd.f32 %v1733_v36, %v1672_v29 }
 0x2cc   : > { %v1703_v25 = vpop.f32.mrf.mxu1 }
 0x2cd   : > { %v1704_v28 = vadd.f32 %v1703_v25, %v1662_v2  ;;  %v1764_v14 = vsel %vm1739_vm0, %v3623_v53, -inf }
 0x2cf   : > { %v1744_v59 = vsel %vm1739_vm0, %v1704_v28, -inf }
 0x2dd   : > { %v1721_v16 = vpop.f32.mrf.mxu2 }
 0x2de   : > { %v3590_v27 = vadd.f32 %v1721_v16, %v1668_v24 }
 0x2e0   : > { %v1756_v39 = vsel %vm1739_vm0, %v3590_v27, -inf }
 0x2e1   : > { %v1757_v12 = vmax.f32 %v1749_v42, %v1756_v39 }
 0x2e3   : > { %v1765_v25 = vmax.f32 %v1757_v12, %v1764_v14 }
 0x2e5   : > { %v1736_v6 = vpop.f32.mrf.mxu3 }
 0x2e6   : > { %v3606_v11 = vadd.f32 %v1736_v6, %v1673_v61 }
 0x2e7   : > { %v1706_v63 = vpop.f32.mrf.mxu1 }
 0x2e8   : > { %v3575_v8 = vadd.f32 %v1706_v63, %v1663_v33  ;;  %v1766_v30 = vsel %vm1739_vm0, %v3606_v11, -inf }
 0x2e9   : > { %v1767_v23 = vmax.f32 %v1759_v1, %v1766_v30 }
 0x2ea   : > { %v1746_v57 = vsel %vm1739_vm0, %v3575_v8, -inf }
 0x2eb   : > { %v1747_v56 = vmax.f32 %v1741_v18, %v1746_v57  ;;  %v1769_v37 = vmax.f32 %v1765_v25, %v1767_v23 }
 0x2ed   : > { %v1755_v21 = vmax.f32 %v1747_v56, %v1754_v44 }
 0x2ee   : > { %v1691_v13 = vpop.f32.mrf.mxu0 }
 0x2ef   : > { %v1692_v10 = vadd.f32 %v1691_v13, %v1658_v51  ;;  %v1763_v3 = vmax.f32 %v1755_v21, %v1762_v50 }
 0x2f1   : > { %v1740_v43 = vsel %vm1739_vm0, %v1692_v10, -inf }
 0x2f2   : > { %v1745_v31 = vmax.f32 %v1740_v43, %v1744_v59 }
 0x2f4   : > { %v1753_v40 = vmax.f32 %v1745_v31, %v1752_v19 }
 0x2f6   : > { %v1761_v36 = vmax.f32 %v1753_v40, %v1760_v20 }
 0x2f8   : > { %v1768_v17 = vmax.f32 %v1761_v36, %v1763_v3 }
 0x2fa   : > { %v1770_v33 = vmax.f32 %v1768_v17, %v1769_v37 }
 0x2fc   : > { %v1771_v7 = vrot.slane %v1770_v33, 4 }
 0x2fe   : > { %v1772_v55 = vmax.f32 %v1770_v33, %v1771_v7 }
 0x300   : > { %v1773_v5 = vrot.slane %v1772_v55, 2 }
 0x302   : > { %v1774_v63 = vmax.f32 %v1772_v55, %v1773_v5 }
 0x304   : > { %v1775_v47 = vrot.slane %v1774_v63, 1 }
 0x306   : > { %v3637_v24 = vmax.f32 %v1774_v63, %v1775_v47 }
 0x308   : > { %v1777_v16 = vsub.f32 %v1692_v10, %v3637_v24  ;;  %v1778_v58 = vsub.f32 %v3577_v62, %v3637_v24  ;;  %v1779_v2 = vsub.f32 %v3579_v38, %v3637_v24  ;;  %v1780_v61 = vsub.f32 %v3569_v4, %v3637_v24 }
 0x309   : > { %v1781_v6 = vsub.f32 %v1704_v28, %v3637_v24  ;;  %v1782_v48 = vsub.f32 %v3575_v8, %v3637_v24  ;;  %v1783_v18 = vsub.f32 %v3582_v26, %v3637_v24  ;;  %v1784_v38 = vsub.f32 %v3571_v49, %v3637_v24 }
 0x30a   : > { %v1793_v15 = vmul.f32 1.442695, %v1777_v16  ;;  %v1795_v57 = vmul.f32 1.442695, %v1778_v58  ;;  %v1797_v9 = vmul.f32 1.442695, %v1779_v2  ;;  %v1785_v32 = vsub.f32 %v3613_v41, %v3637_v24 }
 0x30b   : > { %v1799_v51 = vmul.f32 1.442695, %v1780_v61  ;;  %v1801_v62 = vmul.f32 1.442695, %v1781_v6  ;;  %v1803_v4 = vmul.f32 1.442695, %v1782_v48  ;;  %v1786_v26 = vsub.f32 %v3597_v52, %v3637_v24 }
 0x30c   : > { %2368 = vpow2.f32 %v1793_v15  ;;  %v1805_v0 = vmul.f32 1.442695, %v1783_v18  ;;  %v1807_v28 = vmul.f32 1.442695, %v1784_v38  ;;  %v1787_v56 = vsub.f32 %v3590_v27, %v3637_v24 }
 0x30d   : > { %2370 = vpow2.f32 %v1795_v57  ;;  %v1809_v13 = vmul.f32 1.442695, %v1785_v32  ;;  %v1788_v39 = vsub.f32 %v3586_v45, %v3637_v24  ;;  %v1811_v10 = vmul.f32 1.442695, %v1786_v26 }
 0x30e   : > { %2372 = vpow2.f32 %v1797_v9  ;;  %v1789_v27 = vsub.f32 %v3617_v60, %v3637_v24  ;;  %v1813_v30 = vmul.f32 1.442695, %v1787_v56  ;;  %v1790_v45 = vsub.f32 %v3619_v35, %v3637_v24 }
 0x30f   : > { %2374 = vpow2.f32 %v1799_v51  ;;  %v1815_v21 = vmul.f32 1.442695, %v1788_v39  ;;  %v1791_v60 = vsub.f32 %v3623_v53, %v3637_v24  ;;  %v1792_v35 = vsub.f32 %v3606_v11, %v3637_v24 }
 0x310   : > { %2376 = vpow2.f32 %v1801_v62  ;;  %v1817_v40 = vmul.f32 1.442695, %v1789_v27  ;;  %v1819_v25 = vmul.f32 1.442695, %v1790_v45 }
 0x311   : > { %2378 = vpow2.f32 %v1803_v4  ;;  %v1821_v53 = vmul.f32 1.442695, %v1791_v60  ;;  %v1823_v55 = vmul.f32 1.442695, %v1792_v35  ;;  %v1908_v35 = vld [vmem:[%s3779_s22] sm:$0xff] }
 0x312   : > { %v3655_v34 = vpop.eup %2368  ;;  %2380 = vpow2.f32 %v1805_v0 }
 0x313   : > { %v3657_v8 = vpop.eup %2370  ;;  %v1825_v46 = vsel %vm1739_vm0, %v3655_v34, 0.0  ;;  %2382 = vpow2.f32 %v1807_v28 }
 0x314   : > { %v3663_v49 = vpop.eup %2372  ;;  %v1826_v54 = vsel %vm1739_vm0, %v3657_v8, 0.0  ;;  %2384 = vpow2.f32 %v1809_v13 }
 0x315   : > { %v3667_v29 = vpop.eup %2374  ;;  %v1827_v22 = vadd.f32 %v1826_v54, %v1825_v46  ;;  %v1828_v52 = vsel %vm1739_vm0, %v3663_v49, 0.0  ;;  %2386 = vpow2.f32 %v1811_v10 }
 0x316   : > { %v3673_v41 = vpop.eup %2376  ;;  %v1830_v44 = vsel %vm1739_vm0, %v3667_v29, 0.0  ;;  %2388 = vpow2.f32 %v1813_v30 }
 0x317   : > { %v1829_v42 = vadd.f32 %v1828_v52, %v1827_v22  ;;  %v3679_v59 = vpop.eup %2378  ;;  %v1832_v12 = vsel %vm1739_vm0, %v3673_v41, 0.0  ;;  %2390 = vpow2.f32 %v1815_v21 }
 0x318   : > { %v3685_v1 = vpop.eup %2380  ;;  %v1834_v19 = vsel %vm1739_vm0, %v3679_v59, 0.0  ;;  %2392 = vpow2.f32 %v1817_v40 }
 0x319   : > { %v1831_v43 = vadd.f32 %v1830_v44, %v1829_v42  ;;  %v3691_v23 = vpop.eup %2382  ;;  %v1836_v50 = vsel %vm1739_vm0, %v3685_v1, 0.0  ;;  %2394 = vpow2.f32 %v1819_v25 }
 0x31a   : > { %v3697_v14 = vpop.eup %2384  ;;  %v1838_v36 = vsel %vm1739_vm0, %v3691_v23, 0.0  ;;  %2396 = vpow2.f32 %v1821_v53  ;;  %v1910_v53 = vld [vmem:[%s3779_s22 + $0x10] sm:$0xff] }
 0x31b   : > { %v1833_v31 = vadd.f32 %v1832_v12, %v1831_v43  ;;  %v3703_v37 = vpop.eup %2386  ;;  %v1840_v33 = vsel %vm1739_vm0, %v3697_v14, 0.0  ;;  %2398 = vpow2.f32 %v1823_v55 }
 0x31c   : > { %v3707_v7 = vpop.eup %2388  ;;  %v1842_v11 = vsel %vm1739_vm0, %v3703_v37, 0.0 }
 0x31d   : > { %v1835_v20 = vadd.f32 %v1834_v19, %v1833_v31  ;;  %v2391_v63 = vpop.eup %2390  ;;  %v1844_v24 = vsel %vm1739_vm0, %v3707_v7, 0.0 }
 0x31e   : > { %v3713_v16 = vpop.eup %2392  ;;  %v1846_v2 = vsel %vm1739_vm0, %v2391_v63, 0.0 }
 0x31f   : > { %v1837_v3 = vadd.f32 %v1836_v50, %v1835_v20  ;;  %v3716_v61 = vpop.eup %2394  ;;  %v1848_v15 = vsel %vm1739_vm0, %v3713_v16, 0.0 }
 0x320   : > { %v2397_v57 = vpop.eup %2396  ;;  %v1850_v48 = vsel %vm1739_vm0, %v3716_v61, 0.0 }
 0x321   : > { %v1839_v17 = vadd.f32 %v1838_v36, %v1837_v3  ;;  %v2399_v51 = vpop.eup %2398  ;;  %v1852_v62 = vsel %vm1739_vm0, %v2397_v57, 0.0 }
 0x322   : > { %v1854_v4 = vsel %vm1739_vm0, %v2399_v51, 0.0 }
 0x323   : > { %v1841_v5 = vadd.f32 %v1840_v33, %v1839_v17 }
 0x325   : > { %v1843_v47 = vadd.f32 %v1842_v11, %v1841_v5  ;;  %v1912_v11 = vld [vmem:[%s3779_s22 + $0x20] sm:$0xff] }
 0x327   : > { %v1845_v58 = vadd.f32 %v1844_v24, %v1843_v47 }
 0x329   : > { %v1847_v6 = vadd.f32 %v1846_v2, %v1845_v58  ;;  %v1913_v2 = vld [vmem:[%s3779_s22 + $0x28] sm:$0xff] }
 0x32b   : > { %v1849_v9 = vadd.f32 %v1848_v15, %v1847_v6  ;;  %v1914_v6 = vld [vmem:[%s3779_s22 + $0x30] sm:$0xff] }
 0x32d   : > { %v1851_v18 = vadd.f32 %v1850_v48, %v1849_v9  ;;  %v1915_v48 = vld [vmem:[%s3779_s22 + $0x38] sm:$0xff] }
 0x32f   : > { %v1853_v38 = vadd.f32 %v1852_v62, %v1851_v18 }
 0x331   : > { %v1855_v32 = vadd.f32 %v1854_v4, %v1853_v38 }
 0x333   : > { %v1856_v0 = vrot.slane %v1855_v32, 4 }
 0x335   : > { %v1857_v26 = vadd.f32 %v1856_v0, %v1855_v32  ;;  %v1916_v32 = vld [vmem:[%s3779_s22 + $0x40] sm:$0xff] }
 0x337   : > { %v1858_v28 = vrot.slane %v1857_v26, 2 }
 0x339   : > { %v1859_v46 = vadd.f32 %v1858_v28, %v1857_v26  ;;  %v1917_v26 = vld [vmem:[%s3779_s22 + $0x48] sm:$0xff] }
 0x33b   : > { %v1860_v54 = vrot.slane %v1859_v46, 1 }
 0x33d   : > { %v1861_v56 = vadd.f32 %v1860_v54, %v1859_v46  ;;  %v1918_v54 = vld [vmem:[%s3779_s22 + $0x50] sm:$0xff] }
 0x33f   : > { %2400 = vrcp.f32 %v1861_v56  ;;  %v1873_v39 = vand.u32 2147483648, %v1861_v56  ;;  %v1871_v42 = vand.u32 2147483647, %v1861_v56  ;;  %vm1867_vm2 = vweird.f32 %v1861_v56 }
 0x341   : > { %v1874_v27 = vor.u32 1.1754944e-38, %v1873_v39  ;;  %vm1872_vm4 = vcmp.eq.f32.partialorder %v1871_v42, 8.507059e+37  ;;  %v1919_v42 = vld [vmem:[%s3779_s22 + $0x58] sm:$0xff] }
 0x345   : > { %v2401_v13 = vpop.eup %2400 }
 0x346   : > { %v1863_v22 = vmul.f32 %v2401_v13, %v1861_v56  ;;  %vm1868_vm1 = vweird.f32 %v2401_v13 }
 0x347   : > { %vm1869_vm3 = vmor %vm1867_vm2, %vm1868_vm1 }
 0x348   : > { %v1864_v52 = vsub.f32 1.0, %v1863_v22 }
 0x34a   : > { %v1865_v10 = vmul.f32 %v2401_v13, %v1864_v52 }
 0x34c   : > { %v1866_v44 = vadd.f32 %v2401_v13, %v1865_v10 }
 0x34e   : > { %v1870_v30 = vsel %vm1869_vm3, %v2401_v13, %v1866_v44 }
 0x34f   : > { %v1875_v43 = vsel %vm1872_vm4, %v1874_v27, %v1870_v30  ;;  %v1920_v27 = vld [vmem:[%s3779_s22 + $0x60] sm:$0xff] }
 0x350   : > { %v1878_v12 = vmul.f32 %v3663_v49, %v1875_v43  ;;  %v1877_v45 = vmul.f32 %v3657_v8, %v1875_v43  ;;  %v1876_v21 = vmul.f32 %v3655_v34, %v1875_v43  ;;  %v1881_v31 = vmul.f32 %v3679_v59, %v1875_v43 }
 0x351   : > { %v1880_v19 = vmul.f32 %v3673_v41, %v1875_v43  ;;  %v1879_v49 = vmul.f32 %v3667_v29, %v1875_v43  ;;  %v1884_v34 = vmul.f32 %v3697_v14, %v1875_v43  ;;  %v1883_v8 = vmul.f32 %v3691_v23, %v1875_v43  ;;  %v1909_v14 = vld [vmem:[%s3779_s22 + $0x8] sm:$0xff] }
 0x352   : > { %1936 = vperm.xlu2 %2335, %v1878_v12   ;;  %1894 = vst.msk [vmem:[%s3728_s29 + $0x10] sm:$0xff] %vm1739_vm0, %v1878_v12  ;;  %1931 = vperm.xlu1 %2334, %v1877_v45   ;;  %v1882_v41 = vmul.f32 %v3685_v1, %v1875_v43  ;;  %v1887_v59 = vmul.f32 %v2391_v63, %v1875_v43 }
 0x353   : > { %1893 = vst.msk [vmem:[%s3728_s29 + $0x8] sm:$0xff] %vm1739_vm0, %v1877_v45  ;;  %1926 = vperm.xlu0 %2332, %v1876_v21   ;;  %v1886_v29 = vmul.f32 %v3707_v7, %v1875_v43  ;;  %v1885_v23 = vmul.f32 %v3703_v37, %v1875_v43  ;;  %v1890_v1 = vmul.f32 %v2397_v57, %v1875_v43  ;;  %v1911_v7 = vld [vmem:[%s3779_s22 + $0x18] sm:$0xff] }
 0x354   : > { %1892 = vst.msk [vmem:[%s3728_s29] sm:$0xff] %vm1739_vm0, %v1876_v21  ;;  %v1889_v60 = vmul.f32 %v3716_v61, %v1875_v43  ;;  %v1888_v40 = vmul.f32 %v3713_v16, %v1875_v43  ;;  %v1891_v20 = vmul.f32 %v2399_v51, %v1875_v43  ;;  %v1921_v43 = vld [vmem:[%s3779_s22 + $0x68] sm:$0xff] }
 0x355   : > { %1897 = vst.msk [vmem:[%s3728_s29 + $0x28] sm:$0xff] %vm1739_vm0, %v1881_v31 }
 0x356   : > { %1896 = vst.msk [vmem:[%s3728_s29 + $0x20] sm:$0xff] %vm1739_vm0, %v1880_v19 }
 0x357   : > { %1895 = vst.msk [vmem:[%s3728_s29 + $0x18] sm:$0xff] %vm1739_vm0, %v1879_v49 }
 0x358   : > { %1900 = vst.msk [vmem:[%s3728_s29 + $0x40] sm:$0xff] %vm1739_vm0, %v1884_v34 }
 0x359   : > { %1899 = vst.msk [vmem:[%s3728_s29 + $0x38] sm:$0xff] %vm1739_vm0, %v1883_v8 }
 0x35a   : > { %1951 = vperm.xlu2 %2335, %v1881_v31   ;;  %1946 = vperm.xlu1 %2334, %v1880_v19   ;;  %1898 = vst.msk [vmem:[%s3728_s29 + $0x30] sm:$0xff] %vm1739_vm0, %v1882_v41 }
 0x35b   : > { %1941 = vperm.xlu0 %2332, %v1879_v49   ;;  %1903 = vst.msk [vmem:[%s3728_s29 + $0x58] sm:$0xff] %vm1739_vm0, %v1887_v59 }
 0x35c   : > { %1902 = vst.msk [vmem:[%s3728_s29 + $0x50] sm:$0xff] %vm1739_vm0, %v1886_v29 }
 0x35d   : > { %1901 = vst.msk [vmem:[%s3728_s29 + $0x48] sm:$0xff] %vm1739_vm0, %v1885_v23 }
 0x35e   : > { %1906 = vst.msk [vmem:[%s3728_s29 + $0x70] sm:$0xff] %vm1739_vm0, %v1890_v1 }
 0x35f   : > { %1905 = vst.msk [vmem:[%s3728_s29 + $0x68] sm:$0xff] %vm1739_vm0, %v1889_v60 }
 0x360   : > { %1904 = vst.msk [vmem:[%s3728_s29 + $0x60] sm:$0xff] %vm1739_vm0, %v1888_v40 }
 0x361   : > { %1907 = vst.msk [vmem:[%s3728_s29 + $0x78] sm:$0xff] %vm1739_vm0, %v1891_v20  ;;  %s2417_s29 = sshra.s32 %s2061_s26, 4  ;;  %s2418_s29 = int_to_ptr.hbm [resolvable:$true] %s2417_s29 }
 0x362   : > { %1966 = vperm.xlu2 %2335, %v1884_v34   ;;  %1961 = vperm.xlu1 %2334, %v1883_v8   ;;  %v1922_v34 = vld [vmem:[%s3779_s22 + $0x70] sm:$0xff]  ;;  %s2419_s16 = scalar_lea.hbm %s2418_s29, 1  ;;  %p2424_p0 = scmp.lt.s32.totalorder %s2418_s29, %s3837_s8 }
 0x363   : > { %1956 = vperm.xlu0 %2332, %v1882_v41   ;;  %p2420_p11 = scmp.ne.s32.totalorder %s2418_s29, %s2419_s16  ;;  %p2425_p1 = scmp.lt.s32.totalorder %s2423_s13, %s2419_s16 }
 0x365   : > { %p2421_p12 = pnand %p2420_p11, %p2557_p5  ;;  %p2426_p2 = por %p2425_p1, %p2424_p0 }
 0x367   : > { %p2422_p13 = pneg %p2421_p12 }
 0x369   : > { %p2427_p3 = pnand %p2426_p2, %p2422_p13 }
 0x36a   : > { %1981 = vperm.xlu2 %2335, %v1887_v59   ;;  %1976 = vperm.xlu1 %2334, %v1886_v29   ;;  %v1923_v59 = vld [vmem:[%s3779_s22 + $0x78] sm:$0xff] }
 0x36b   : > { %1971 = vperm.xlu0 %2332, %v1885_v23  }
 0x372   : > { %1996 = vperm.xlu2 %2335, %v1890_v1   ;;  %1991 = vperm.xlu1 %2334, %v1889_v60  }
 0x373   : > { %1986 = vperm.xlu0 %2332, %v1888_v40  }
 0x37b   : > { %2001 = vperm.xlu0 %2332, %v1891_v20  }
 0x3ac   : > { %v1937_v50 = vpop.permute.xlu2 %1936 }
 0x3ad   : > { %v2006_v55 = vmul.f32 %v1937_v50, %v1910_v53 }
 0x3b4   : > { %v1952_v33 = vpop.permute.xlu2 %1951 }
 0x3b5   : > { %v2009_v15 = vmul.f32 %v1952_v33, %v1913_v2 }
 0x3bc   : > { %v1967_v9 = vpop.permute.xlu2 %1966 }
 0x3bd   : > { %v2012_v28 = vmul.f32 %v1967_v9, %v1916_v32 }
 0x3c4   : > { %v1932_v25 = vpop.permute.xlu1 %1931  ;;  %v1982_v52 = vpop.permute.xlu2 %1981 }
 0x3c5   : > { %v1927_v3 = vpop.permute.xlu0 %1926  ;;  %v2005_v36 = vmul.f32 %v1932_v25, %v1909_v14  ;;  %v2015_v30 = vmul.f32 %v1982_v52, %v1919_v42 }
 0x3c6   : > { %v2004_v37 = vmul.f32 %v1927_v3, %v1908_v35 }
 0x3c8   : > { %v2020_v17 = vadd.f32 %v2005_v36, %v2004_v37 }
 0x3ca   : > { %v2021_v47 = vadd.f32 %v2020_v17, %v2006_v55 }
 0x3cc   : > { %v1947_v5 = vpop.permute.xlu1 %1946  ;;  %v1997_v8 = vpop.permute.xlu2 %1996 }
 0x3cd   : > { %v1942_v63 = vpop.permute.xlu0 %1941  ;;  %v2008_v16 = vmul.f32 %v1947_v5, %v1912_v11  ;;  %v2018_v29 = vmul.f32 %v1997_v8, %v1922_v34 }
 0x3ce   : > { %v2007_v24 = vmul.f32 %v1942_v63, %v1911_v7 }
 0x3d0   : > { %v2022_v58 = vadd.f32 %v2021_v47, %v2007_v24 }
 0x3d2   : > { %v2023_v61 = vadd.f32 %v2022_v58, %v2008_v16 }
 0x3d4   : > { %v1962_v57 = vpop.permute.xlu1 %1961  ;;  %v2024_v18 = vadd.f32 %v2023_v61, %v2009_v15 }
 0x3d5   : > { %v1957_v51 = vpop.permute.xlu0 %1956  ;;  %v2011_v38 = vmul.f32 %v1962_v57, %v1915_v48 }
 0x3d6   : > { %v2010_v62 = vmul.f32 %v1957_v51, %v1914_v6 }
 0x3d8   : > { %v2025_v4 = vadd.f32 %v2024_v18, %v2010_v62 }
 0x3da   : > { %v2026_v0 = vadd.f32 %v2025_v4, %v2011_v38 }
 0x3dc   : > { %v1977_v46 = vpop.permute.xlu1 %1976  ;;  %v2027_v13 = vadd.f32 %v2026_v0, %v2012_v28 }
 0x3dd   : > { %v1972_v56 = vpop.permute.xlu0 %1971  ;;  %v2014_v39 = vmul.f32 %v1977_v46, %v1918_v54 }
 0x3de   : > { %v2013_v22 = vmul.f32 %v1972_v56, %v1917_v26 }
 0x3e0   : > { %v2028_v10 = vadd.f32 %v2027_v13, %v2013_v22 }
 0x3e2   : > { %v2029_v44 = vadd.f32 %v2028_v10, %v2014_v39 }
 0x3e4   : > { %v1992_v12 = vpop.permute.xlu1 %1991  ;;  %v2030_v21 = vadd.f32 %v2029_v44, %v2015_v30 }
 0x3e5   : > { %v1987_v45 = vpop.permute.xlu0 %1986  ;;  %v2017_v19 = vmul.f32 %v1992_v12, %v1921_v43 }
 0x3e6   : > { %v2016_v31 = vmul.f32 %v1987_v45, %v1920_v27 }
 0x3e8   : > { %v2031_v49 = vadd.f32 %v2030_v21, %v2016_v31 }
 0x3ea   : > { %v2032_v41 = vadd.f32 %v2031_v49, %v2017_v19 }
 0x3ec   : > { %v2033_v1 = vadd.f32 %v2032_v41, %v2018_v29 }
 0x3ed   : > { %v2002_v23 = vpop.permute.xlu0 %2001 }
 0x3ee   : > { %v2019_v60 = vmul.f32 %v2002_v23, %v1923_v59 }
 0x3f0   : > { %v2034_v40 = vadd.f32 %v2033_v1, %v2019_v60 }
 0x3f2   : > { %v2035_v20 = vrot.slane %v2034_v40, 4 }
 0x3f4   : > { %v2036_v50 = vadd.f32 %v2035_v20, %v2034_v40 }
 0x3f6   : > { %v2037_v14 = vrot.slane %v2036_v50, 2 }
 0x3f8   : > { %v2038_v35 = vadd.f32 %v2037_v14, %v2036_v50 }
 0x3fa   : > { %v2039_v25 = vrot.slane %v2038_v35, 1 }
 0x3fc   : > { %v2040_v3 = vadd.f32 %v2039_v25, %v2038_v35 }
 0x3fe   : > { %2041 = vst [vmem:[%s381_s27] sm:$0x1] %v2040_v3 }
 0x3ff   : > { %2430 = shalt.err (!%p2427_p3)
}
 0x400   : > { %2260 = dma.vmem_to_hbm [thread:$0]  (%p2557_p5), %s2059_s25, 16, %s2061_s26, %s2043_s28  }
 0x401 PF: > { %p2266_p4 = scmp.ge.s32.totalorder %s2465_s12, 2  ;;  %s2075_s14 = sand.u32 1, %s2453_s30  }
 0x402   : > { %s2076_s21 = scalar_lea.sflag [#allocation3], %s2075_s14 }
 0x403   : > { %p2263_p7 = pnand %p2266_p4, %p2561_p6 }
 0x405   : > { %p2264_p8 = pneg %p2263_p7 }
 0x407   : > { %2448 = dma.done.wait (%p2264_p8), %s2076_s21, 16  }
 0x408   : > { %2450 = vsyncadd (%p2264_p8), %s2076_s21, 4294967280  ;;  %p20_p9 = scmp.ge.s32.totalorder %s2544_s15, 4   ;;  %s3898_s30 = smov %s2457_s10 }
 0x409   : > { %s3899_s10 = smov %s2461_s11  ;;  %s3900_s11 = smov %s2555_s18 }
 0x40a   : > { %s3901_s12 = smov %s2544_s15  ;;  %22 = sbr.rel (!%p20_p9) target bundleno = 3 (0x3), region = 115 }
 0x40f   :  { %2089 = vsyncpa [#allocation3], 1 }
 0x410   :  { %2091 = vsyncpa [#allocation3 + $0x1], 1 }

</bundles_post_ra>
